<compile_context>
chip_gen: v6e
topology: v6e:2x2x1
jax: 0.10.0
libtpu: 0.0.40
codegen_flags: <defaults>
</compile_context>

<pallas_src>
from functools import partial

import jax
import jax.numpy as jnp
from jax import lax
from jax.experimental import pallas as pl
from jax.experimental.pallas import tpu as pltpu


def _round_up(x, m):
    return (x + m - 1) // m * m


def _tpu_generation():
    """Best-effort TPU generation (5/6/7/...) parsed from device_kind."""
    try:
        kind = jax.devices()[0].device_kind.lower()
    except Exception:
        return None
    for gen in (7, 6, 5, 4, 3, 2):
        if f"v{gen}" in kind or f"tpu{gen}" in kind:
            return gen
    return None


def _pick_q_tile(n, gen):
    # v6e: fill the 256-deep MXU M dimension; v5e (128x128 MXU) and
    # v7x (64 MiB VMEM) prefer 128-row query tiles.
    prefs = (256, 128) if gen == 6 else (128, 256)
    for t in prefs:
        if n % t == 0:
            return t
    if n < 128:
        return _round_up(n, 8)   # single (sublane-aligned) query tile
    return 128                   # pad N up to a multiple of 128


def _attention_kernel(x_ref, wqkv_ref, wp_ref, bp_ref, o_ref, kv_ref, ctx_ref,
                      *, num_heads, head_dim, dim, q_tile, n_keys, exp_dtype):
    C, H, D = dim, num_heads, head_dim
    qi = pl.program_id(1)
    n_pad = kv_ref.shape[0]

    # --- K/V projection for the whole (padded) sequence: once per batch. ---
    # TODO(synk): for short sequences (small nq) split this across the first
    # few qi steps (or hoist to a separate pallas_call) to remove the startup
    # bubble; also enables a qi-parallel axis for B==1 on v7x.
    @pl.when(qi == 0)
    def _():
        xkv = x_ref[0]                                     # (Npad, C) bf16
        kv = jnp.dot(xkv, wqkv_ref[:, C:3 * C],
                     preferred_element_type=jnp.float32)   # (Npad, 2C) f32
        kv_ref[...] = kv.astype(kv_ref.dtype)              # resident [K | V]

    # --- Q projection for this query tile: rows come from the resident x
    #     block (x is NOT streamed a second time); scale folded into Wq. ----
    row0 = pl.multiple_of(qi * q_tile, q_tile)
    xq = x_ref[0, pl.ds(row0, q_tile), :]                  # (TQ, C) bf16
    q = jnp.dot(xq, wqkv_ref[:, 0:C],
                preferred_element_type=jnp.float32).astype(xq.dtype)

    # Additive bias masking padded key columns (shapes are static at trace).
    if n_keys < n_pad:
        key_idx = lax.broadcasted_iota(jnp.int32, (1, n_pad), 1)
        mask_bias = jnp.where(key_idx < n_keys, 0.0, -1e30).astype(jnp.float32)
    else:
        mask_bias = None

    # --- Per-head attention; context written into a (TQ, C) VMEM scratch. --
    # TODO(synk): if bundle dumps show spills for large H, switch to a
    # lax.fori_loop over heads with pl.ds head slicing.
    for h in range(H):
        lo = h * D
        qh = q[:, lo:lo + D]                               # (TQ, D)  bf16
        kh = kv_ref[:, lo:lo + D]                          # (Npad, D) bf16
        vh = kv_ref[:, C + lo:C + lo + D]                  # (Npad, D) bf16

        # Contract last axes directly: no K transpose / relayout.
        s = lax.dot_general(qh, kh, (((1,), (1,)), ((), ())),
                            preferred_element_type=jnp.float32)  # (TQ, Npad)
        if mask_bias is not None:
            s = s + mask_bias
        m = jnp.max(s, axis=-1, keepdims=True)
        e = jnp.exp((s - m).astype(exp_dtype))             # bf16 EUP on v6e/v7x
        denom = jnp.sum(e, axis=-1, keepdims=True, dtype=jnp.float32)

        # Unnormalized E @ V, then one cheap reciprocal-scale on (TQ, D).
        oh = jnp.dot(e.astype(vh.dtype), vh,
                     preferred_element_type=jnp.float32)   # (TQ, D) f32
        oh = oh * pl.reciprocal(denom, approx=True)
        ctx_ref[:, lo:lo + D] = oh.astype(ctx_ref.dtype)

    # --- Single full-C output projection (one C-deep MXU contraction). -----
    out = jnp.dot(ctx_ref[...], wp_ref[...],
                  preferred_element_type=jnp.float32) + bp_ref[...]
    o_ref[0] = out.astype(o_ref.dtype)


def attention_pallas(x, wq_t, wk_t, wv_t, wp_t, bp, *, num_heads,
                     compute_dtype=jnp.bfloat16):
    """x: (B, N, C); w*_t: (C, C) already transposed to (in, out); bp: (C,)."""
    B, N, C = x.shape
    assert C % num_heads == 0
    D = C // num_heads
    scale = D ** (-0.5)

    gen = _tpu_generation()
    TQ = _pick_q_tile(N, gen)
    N_pad = _round_up(N, TQ)
    nq = N_pad // TQ

    # bf16 exp is profitable and supported on v6e/v7x; keep f32 on v5e/unknown.
    exp_dtype = jnp.bfloat16 if (gen is not None and gen >= 6) else jnp.float32

    # Generation-aware VMEM cap: leave headroom under v7x's 64 MiB/TC; v5e/v6e
    # have 128 MiB physical so a higher limit is safe.
    if gen is not None and gen >= 7:
        vmem_limit = 48 * 1024 * 1024
    elif gen in (5, 6):
        vmem_limit = 96 * 1024 * 1024
    else:
        vmem_limit = 64 * 1024 * 1024

    # Fused QKV weight (C, 3C); softmax scale folded into the Q columns.
    wqkv = jnp.concatenate([wq_t * scale, wk_t, wv_t], axis=1).astype(compute_dtype)
    wp = wp_t.astype(compute_dtype)
    bp2 = bp.reshape(1, C).astype(jnp.float32)
    xc = x.astype(compute_dtype)
    if N_pad != N:
        xc = jnp.pad(xc, ((0, 0), (0, N_pad - N), (0, 0)))

    kernel = partial(_attention_kernel, num_heads=num_heads, head_dim=D, dim=C,
                     q_tile=TQ, n_keys=N, exp_dtype=exp_dtype)

    flops = (2 * B * N_pad * C * (3 * C)          # fused QKV projection
             + 4 * B * N_pad * N_pad * C          # scores + P @ V
             + 2 * B * N_pad * C * C)             # output projection
    bytes_accessed = (B * N_pad * C * 2           # x read once (bf16)
                      + (3 * C * C + C * C) * 2 + C * 4
                      + B * N_pad * C * x.dtype.itemsize)
    cost = pl.CostEstimate(flops=int(flops),
                           transcendentals=int(B * num_heads * N_pad * N_pad),
                           bytes_accessed=int(bytes_accessed))

    def make_call(single_buffer_weights):
        def const_spec(shape):
            idx = lambda b, qi: (0,) * len(shape)
            if single_buffer_weights:
                # Invariant operands: double-buffering buys nothing.
                return pl.BlockSpec(shape, idx, pipeline_mode=pl.Buffered(1))
            return pl.BlockSpec(shape, idx)

        return pl.pallas_call(
            kernel,
            out_shape=jax.ShapeDtypeStruct((B, N_pad, C), x.dtype),
            grid_spec=pltpu.PrefetchScalarGridSpec(
                num_scalar_prefetch=0,
                grid=(B, nq),
                in_specs=[
                    # Full (padded) sequence, resident across the qi axis;
                    # feeds both per-tile Q rows and the K/V projection.
                    pl.BlockSpec((1, N_pad, C), lambda b, qi: (b, 0, 0)),
                    const_spec((C, 3 * C)),       # fused W_qkv
                    const_spec((C, C)),           # W_proj
                    const_spec((1, C)),           # proj bias
                ],
                out_specs=pl.BlockSpec((1, TQ, C), lambda b, qi: (b, qi, 0)),
                scratch_shapes=[
                    pltpu.VMEM((N_pad, 2 * C), compute_dtype),   # resident K|V
                    pltpu.VMEM((TQ, C), compute_dtype),          # per-tile context
                ],
            ),
            # TODO(synk): on v7x with B == 1 make the query-tile axis the
            # parallel one (needs the KV projection hoisted out of qi == 0).
            compiler_params=pltpu.CompilerParams(
                dimension_semantics=("parallel", "arbitrary"),
                vmem_limit_bytes=vmem_limit),
            cost_estimate=cost,
        )

    args = (xc, wqkv, wp, bp2)
    try:
        out = jax.block_until_ready(make_call(True)(*args))
    except Exception:
        # Fallback for runtimes without BlockSpec pipeline_mode support.
        out = make_call(False)(*args)

    if N_pad != N:
        out = out[:, :N, :]
    return out


def attention_reference(x, wq_t, wk_t, wv_t, wp_t, bp, *, num_heads):
    """Pure-JAX f32 reference mirroring the PyTorch forward exactly."""
    B, N, C = x.shape
    D = C // num_heads
    scale = D ** (-0.5)
    q = (x @ wq_t).reshape(B, N, num_heads, D).transpose(0, 2, 1, 3)
    k = (x @ wk_t).reshape(B, N, num_heads, D).transpose(0, 2, 1, 3)
    v = (x @ wv_t).reshape(B, N, num_heads, D).transpose(0, 2, 1, 3)
    attn = (q @ jnp.swapaxes(k, -2, -1)) * scale
    attn = jax.nn.softmax(attn, axis=-1)
    out = (attn @ v).transpose(0, 2, 1, 3).reshape(B, N, C)
    return out @ wp_t + bp


if __name__ == "__main__":
    # Small, module-consistent shapes: B=2, N=32 tokens (input_size (2,4,4)),
    # C=32 channels, 4 heads (head_dim=8).
    B, N, C = 2, 32, 32
    num_heads = 4

    key = jax.random.PRNGKey(0)
    kx, kq, kk, kv, kp, kb, kx2 = jax.random.split(key, 7)

    x = jax.random.normal(kx, (B, N, C), dtype=jnp.float32)

    # torch Linear weight is (out, in); we store the transposed (in, out) form.
    wq_t = jax.random.normal(kq, (C, C), dtype=jnp.float32) * 0.05
    wk_t = jax.random.normal(kk, (C, C), dtype=jnp.float32) * 0.05
    wv_t = jax.random.normal(kv, (C, C), dtype=jnp.float32) * 0.05
    wp_t = jax.random.normal(kp, (C, C), dtype=jnp.float32) * 0.05
    bp = jax.random.normal(kb, (C,), dtype=jnp.float32) * 0.05

    out = attention_pallas(x, wq_t, wk_t, wv_t, wp_t, bp, num_heads=num_heads)
    out = jax.block_until_ready(out)

    ref = attention_reference(x, wq_t, wk_t, wv_t, wp_t, bp, num_heads=num_heads)
    assert out.shape == (B, N, C)
    # bf16 MXU operands (+ bf16 exp on v6e/v7x) and approximate reciprocal =>
    # small expected deltas vs the f32 reference; tolerance loosened.
    assert jnp.allclose(out, ref, atol=2e-2, rtol=2e-2), (
        float(jnp.max(jnp.abs(out - ref))))

    # Exercise the padded / masked-key path (N not tile-aligned).
    N2 = 20
    x2 = jax.random.normal(kx2, (1, N2, C), dtype=jnp.float32)
    out2 = jax.block_until_ready(
        attention_pallas(x2, wq_t, wk_t, wv_t, wp_t, bp, num_heads=num_heads))
    ref2 = attention_reference(x2, wq_t, wk_t, wv_t, wp_t, bp,
                               num_heads=num_heads)
    assert out2.shape == (1, N2, C)
    assert jnp.allclose(out2, ref2, atol=2e-2, rtol=2e-2), (
        float(jnp.max(jnp.abs(out2 - ref2))))

    print("KERNEL_OK")
</pallas_src>

<mosaic_0001>
module attributes {stable_mosaic.version = 11 : i64} {
  func.func @_attention_kernel(%arg0: i32, %arg1: i32, %arg2: memref<1x32x32xbf16, #tpu.memory_space<vmem>>, %arg3: memref<32x96xbf16, #tpu.memory_space<vmem>>, %arg4: memref<32x32xbf16, #tpu.memory_space<vmem>>, %arg5: memref<1x32xf32, #tpu.memory_space<vmem>>, %arg6: memref<1x32x32xf32, #tpu.memory_space<vmem>>, %arg7: memref<32x64xbf16, #tpu.memory_space<vmem>>, %arg8: memref<32x32xbf16, #tpu.memory_space<vmem>>) attributes {dimension_semantics = [#tpu.dimension_semantics<parallel>, #tpu.dimension_semantics<arbitrary>], iteration_bounds = array<i64: 2, 1>, scalar_prefetch = 0 : i64, scratch_operands = 2 : i64, tpu.core_type = #tpu.core_type<tc>, window_params = [{transform_indices = @transform_0, window_bounds = array<i64: 1, 32, 32>}, {pipeline_mode = #tpu.pipeline_mode<synchronous>, transform_indices = @transform_1, window_bounds = array<i64: 32, 96>}, {pipeline_mode = #tpu.pipeline_mode<synchronous>, transform_indices = @transform_2, window_bounds = array<i64: 32, 32>}, {pipeline_mode = #tpu.pipeline_mode<synchronous>, transform_indices = @transform_3, window_bounds = array<i64: 1, 32>}, {transform_indices = @transform_4, window_bounds = array<i64: 1, 32, 32>}]} {
    %c0_i32 = arith.constant 0 : i32
    %0 = arith.cmpi eq, %arg1, %c0_i32 : i32
    %1 = arith.extui %0 : i1 to i32
    %c0_i32_0 = arith.constant 0 : i32
    %2 = arith.cmpi ne, %1, %c0_i32_0 : i32
    scf.if %2 {
      %c0_47 = arith.constant 0 : index
      %c0_48 = arith.constant 0 : index
      %c0_49 = arith.constant 0 : index
      %92 = vector.load %arg2[%c0_47, %c0_48, %c0_49] : memref<1x32x32xbf16, #tpu.memory_space<vmem>>, vector<1x32x32xbf16>
      %93 = vector.shape_cast %92 : vector<1x32x32xbf16> to vector<32x32xbf16>
      %c0_50 = arith.constant 0 : index
      %c32_51 = arith.constant 32 : index
      %94 = vector.load %arg3[%c0_50, %c32_51] : memref<32x96xbf16, #tpu.memory_space<vmem>>, vector<32x64xbf16>
      %cst_52 = arith.constant dense<0.000000e+00> : vector<32x64xf32>
      %95 = tpu.matmul %93, %94, %cst_52 {dimension_numbers = #tpu.dot_dimension_numbers<[1], [0], [0], [1], [0, 0, 1, 1], [], []>} : vector<32x32xbf16>, vector<32x64xbf16>, vector<32x64xf32> -> vector<32x64xf32>
      %96 = arith.truncf %95 : vector<32x64xf32> to vector<32x64xbf16>
      %c0_53 = arith.constant 0 : index
      %c0_54 = arith.constant 0 : index
      %97 = vector.load %arg7[%c0_53, %c0_54] : memref<32x64xbf16, #tpu.memory_space<vmem>>, vector<32x64xbf16>
      tpu.vector_store %arg7[%c0_53, %c0_54], %96 {strides = array<i32>} : memref<32x64xbf16, #tpu.memory_space<vmem>>, vector<32x64xbf16>,
    } else {
    }
    %c32_i32 = arith.constant 32 : i32
    %3 = arith.muli %arg1, %c32_i32 : i32
    %4 = tpu.assume_multiple %3, 32 : i32
    %c0 = arith.constant 0 : index
    %5 = arith.index_cast %4 : i32 to index
    %c0_1 = arith.constant 0 : index
    %6 = vector.load %arg2[%c0, %5, %c0_1] : memref<1x32x32xbf16, #tpu.memory_space<vmem>>, vector<1x32x32xbf16>
    %7 = vector.shape_cast %6 : vector<1x32x32xbf16> to vector<32x32xbf16>
    %c0_2 = arith.constant 0 : index
    %c0_3 = arith.constant 0 : index
    %8 = vector.load %arg3[%c0_2, %c0_3] : memref<32x96xbf16, #tpu.memory_space<vmem>>, vector<32x32xbf16>
    %cst = arith.constant dense<0.000000e+00> : vector<32x32xf32>
    %9 = tpu.matmul %7, %8, %cst {dimension_numbers = #tpu.dot_dimension_numbers<[1], [0], [0], [1], [0, 0, 1, 1], [], []>} : vector<32x32xbf16>, vector<32x32xbf16>, vector<32x32xf32> -> vector<32x32xf32>
    %10 = arith.truncf %9 : vector<32x32xf32> to vector<32x32xbf16>
    %11 = vector.extract_strided_slice %10 {offsets = [0, 0], sizes = [32, 8], strides = [1, 1]} : vector<32x32xbf16> to vector<32x8xbf16>
    %c0_4 = arith.constant 0 : index
    %c0_5 = arith.constant 0 : index
    %12 = vector.load %arg7[%c0_4, %c0_5] : memref<32x64xbf16, #tpu.memory_space<vmem>>, vector<32x8xbf16>
    %c0_6 = arith.constant 0 : index
    %c32 = arith.constant 32 : index
    %13 = vector.load %arg7[%c0_6, %c32] : memref<32x64xbf16, #tpu.memory_space<vmem>>, vector<32x8xbf16>
    %cst_7 = arith.constant dense<0.000000e+00> : vector<32x32xf32>
    %14 = tpu.matmul %11, %12, %cst_7 {dimension_numbers = #tpu.dot_dimension_numbers<[1], [1], [0], [0], [0, 0, 1, 0], [], []>} : vector<32x8xbf16>, vector<32x8xbf16>, vector<32x32xf32> -> vector<32x32xf32>
    %cst_8 = arith.constant dense<0xFF800000> : vector<32xf32>
    %15 = vector.multi_reduction <maximumf>, %14, %cst_8 [1] : vector<32x32xf32> to vector<32xf32>
    %16 = vector.shape_cast %15 : vector<32xf32> to vector<32x1xf32>
    %17 = vector.broadcast %16 : vector<32x1xf32> to vector<32x32xf32>
    %18 = arith.subf %14, %17 : vector<32x32xf32>
    %19 = math.exp %18 : vector<32x32xf32>
    %cst_9 = arith.constant dense<0.000000e+00> : vector<32xf32>
    %20 = vector.multi_reduction <add>, %19, %cst_9 [1] : vector<32x32xf32> to vector<32xf32>
    %21 = vector.shape_cast %20 : vector<32xf32> to vector<32x1xf32>
    %22 = arith.truncf %19 : vector<32x32xf32> to vector<32x32xbf16>
    %cst_10 = arith.constant dense<0.000000e+00> : vector<32x8xf32>
    %23 = tpu.matmul %22, %13, %cst_10 {dimension_numbers = #tpu.dot_dimension_numbers<[1], [0], [0], [1], [0, 0, 1, 1], [], []>} : vector<32x32xbf16>, vector<32x8xbf16>, vector<32x8xf32> -> vector<32x8xf32>
    %24 = tpu.reciprocal %21 {approx = true} : vector<32x1xf32> -> vector<32x1xf32>
    %25 = vector.broadcast %24 : vector<32x1xf32> to vector<32x8xf32>
    %26 = arith.mulf %23, %25 : vector<32x8xf32>
    %27 = arith.truncf %26 : vector<32x8xf32> to vector<32x8xbf16>
    %c0_11 = arith.constant 0 : index
    %c0_12 = arith.constant 0 : index
    %28 = vector.load %arg8[%c0_11, %c0_12] : memref<32x32xbf16, #tpu.memory_space<vmem>>, vector<32x8xbf16>
    tpu.vector_store %arg8[%c0_11, %c0_12], %27 {strides = array<i32>} : memref<32x32xbf16, #tpu.memory_space<vmem>>, vector<32x8xbf16>,
    %29 = vector.extract_strided_slice %10 {offsets = [0, 8], sizes = [32, 8], strides = [1, 1]} : vector<32x32xbf16> to vector<32x8xbf16>
    %c0_13 = arith.constant 0 : index
    %c8 = arith.constant 8 : index
    %30 = vector.load %arg7[%c0_13, %c8] : memref<32x64xbf16, #tpu.memory_space<vmem>>, vector<32x8xbf16>
    %c0_14 = arith.constant 0 : index
    %c40 = arith.constant 40 : index
    %31 = vector.load %arg7[%c0_14, %c40] : memref<32x64xbf16, #tpu.memory_space<vmem>>, vector<32x8xbf16>
    %cst_15 = arith.constant dense<0.000000e+00> : vector<32x32xf32>
    %32 = tpu.matmul %29, %30, %cst_15 {dimension_numbers = #tpu.dot_dimension_numbers<[1], [1], [0], [0], [0, 0, 1, 0], [], []>} : vector<32x8xbf16>, vector<32x8xbf16>, vector<32x32xf32> -> vector<32x32xf32>
    %cst_16 = arith.constant dense<0xFF800000> : vector<32xf32>
    %33 = vector.multi_reduction <maximumf>, %32, %cst_16 [1] : vector<32x32xf32> to vector<32xf32>
    %34 = vector.shape_cast %33 : vector<32xf32> to vector<32x1xf32>
    %35 = vector.broadcast %34 : vector<32x1xf32> to vector<32x32xf32>
    %36 = arith.subf %32, %35 : vector<32x32xf32>
    %37 = math.exp %36 : vector<32x32xf32>
    %cst_17 = arith.constant dense<0.000000e+00> : vector<32xf32>
    %38 = vector.multi_reduction <add>, %37, %cst_17 [1] : vector<32x32xf32> to vector<32xf32>
    %39 = vector.shape_cast %38 : vector<32xf32> to vector<32x1xf32>
    %40 = arith.truncf %37 : vector<32x32xf32> to vector<32x32xbf16>
    %cst_18 = arith.constant dense<0.000000e+00> : vector<32x8xf32>
    %41 = tpu.matmul %40, %31, %cst_18 {dimension_numbers = #tpu.dot_dimension_numbers<[1], [0], [0], [1], [0, 0, 1, 1], [], []>} : vector<32x32xbf16>, vector<32x8xbf16>, vector<32x8xf32> -> vector<32x8xf32>
    %42 = tpu.reciprocal %39 {approx = true} : vector<32x1xf32> -> vector<32x1xf32>
    %43 = vector.broadcast %42 : vector<32x1xf32> to vector<32x8xf32>
    %44 = arith.mulf %41, %43 : vector<32x8xf32>
    %45 = arith.truncf %44 : vector<32x8xf32> to vector<32x8xbf16>
    %c0_19 = arith.constant 0 : index
    %c8_20 = arith.constant 8 : index
    %46 = vector.load %arg8[%c0_19, %c8_20] : memref<32x32xbf16, #tpu.memory_space<vmem>>, vector<32x8xbf16>
    tpu.vector_store %arg8[%c0_19, %c8_20], %45 {strides = array<i32>} : memref<32x32xbf16, #tpu.memory_space<vmem>>, vector<32x8xbf16>,
    %47 = vector.extract_strided_slice %10 {offsets = [0, 16], sizes = [32, 8], strides = [1, 1]} : vector<32x32xbf16> to vector<32x8xbf16>
    %c0_21 = arith.constant 0 : index
    %c16 = arith.constant 16 : index
    %48 = vector.load %arg7[%c0_21, %c16] : memref<32x64xbf16, #tpu.memory_space<vmem>>, vector<32x8xbf16>
    %c0_22 = arith.constant 0 : index
    %c48 = arith.constant 48 : index
    %49 = vector.load %arg7[%c0_22, %c48] : memref<32x64xbf16, #tpu.memory_space<vmem>>, vector<32x8xbf16>
    %cst_23 = arith.constant dense<0.000000e+00> : vector<32x32xf32>
    %50 = tpu.matmul %47, %48, %cst_23 {dimension_numbers = #tpu.dot_dimension_numbers<[1], [1], [0], [0], [0, 0, 1, 0], [], []>} : vector<32x8xbf16>, vector<32x8xbf16>, vector<32x32xf32> -> vector<32x32xf32>
    %cst_24 = arith.constant dense<0xFF800000> : vector<32xf32>
    %51 = vector.multi_reduction <maximumf>, %50, %cst_24 [1] : vector<32x32xf32> to vector<32xf32>
    %52 = vector.shape_cast %51 : vector<32xf32> to vector<32x1xf32>
    %53 = vector.broadcast %52 : vector<32x1xf32> to vector<32x32xf32>
    %54 = arith.subf %50, %53 : vector<32x32xf32>
    %55 = math.exp %54 : vector<32x32xf32>
    %cst_25 = arith.constant dense<0.000000e+00> : vector<32xf32>
    %56 = vector.multi_reduction <add>, %55, %cst_25 [1] : vector<32x32xf32> to vector<32xf32>
    %57 = vector.shape_cast %56 : vector<32xf32> to vector<32x1xf32>
    %58 = arith.truncf %55 : vector<32x32xf32> to vector<32x32xbf16>
    %cst_26 = arith.constant dense<0.000000e+00> : vector<32x8xf32>
    %59 = tpu.matmul %58, %49, %cst_26 {dimension_numbers = #tpu.dot_dimension_numbers<[1], [0], [0], [1], [0, 0, 1, 1], [], []>} : vector<32x32xbf16>, vector<32x8xbf16>, vector<32x8xf32> -> vector<32x8xf32>
    %60 = tpu.reciprocal %57 {approx = true} : vector<32x1xf32> -> vector<32x1xf32>
    %61 = vector.broadcast %60 : vector<32x1xf32> to vector<32x8xf32>
    %62 = arith.mulf %59, %61 : vector<32x8xf32>
    %63 = arith.truncf %62 : vector<32x8xf32> to vector<32x8xbf16>
    %c0_27 = arith.constant 0 : index
    %c16_28 = arith.constant 16 : index
    %64 = vector.load %arg8[%c0_27, %c16_28] : memref<32x32xbf16, #tpu.memory_space<vmem>>, vector<32x8xbf16>
    tpu.vector_store %arg8[%c0_27, %c16_28], %63 {strides = array<i32>} : memref<32x32xbf16, #tpu.memory_space<vmem>>, vector<32x8xbf16>,
    %65 = vector.extract_strided_slice %10 {offsets = [0, 24], sizes = [32, 8], strides = [1, 1]} : vector<32x32xbf16> to vector<32x8xbf16>
    %c0_29 = arith.constant 0 : index
    %c24 = arith.constant 24 : index
    %66 = vector.load %arg7[%c0_29, %c24] : memref<32x64xbf16, #tpu.memory_space<vmem>>, vector<32x8xbf16>
    %c0_30 = arith.constant 0 : index
    %c56 = arith.constant 56 : index
    %67 = vector.load %arg7[%c0_30, %c56] : memref<32x64xbf16, #tpu.memory_space<vmem>>, vector<32x8xbf16>
    %cst_31 = arith.constant dense<0.000000e+00> : vector<32x32xf32>
    %68 = tpu.matmul %65, %66, %cst_31 {dimension_numbers = #tpu.dot_dimension_numbers<[1], [1], [0], [0], [0, 0, 1, 0], [], []>} : vector<32x8xbf16>, vector<32x8xbf16>, vector<32x32xf32> -> vector<32x32xf32>
    %cst_32 = arith.constant dense<0xFF800000> : vector<32xf32>
    %69 = vector.multi_reduction <maximumf>, %68, %cst_32 [1] : vector<32x32xf32> to vector<32xf32>
    %70 = vector.shape_cast %69 : vector<32xf32> to vector<32x1xf32>
    %71 = vector.broadcast %70 : vector<32x1xf32> to vector<32x32xf32>
    %72 = arith.subf %68, %71 : vector<32x32xf32>
    %73 = math.exp %72 : vector<32x32xf32>
    %cst_33 = arith.constant dense<0.000000e+00> : vector<32xf32>
    %74 = vector.multi_reduction <add>, %73, %cst_33 [1] : vector<32x32xf32> to vector<32xf32>
    %75 = vector.shape_cast %74 : vector<32xf32> to vector<32x1xf32>
    %76 = arith.truncf %73 : vector<32x32xf32> to vector<32x32xbf16>
    %cst_34 = arith.constant dense<0.000000e+00> : vector<32x8xf32>
    %77 = tpu.matmul %76, %67, %cst_34 {dimension_numbers = #tpu.dot_dimension_numbers<[1], [0], [0], [1], [0, 0, 1, 1], [], []>} : vector<32x32xbf16>, vector<32x8xbf16>, vector<32x8xf32> -> vector<32x8xf32>
    %78 = tpu.reciprocal %75 {approx = true} : vector<32x1xf32> -> vector<32x1xf32>
    %79 = vector.broadcast %78 : vector<32x1xf32> to vector<32x8xf32>
    %80 = arith.mulf %77, %79 : vector<32x8xf32>
    %81 = arith.truncf %80 : vector<32x8xf32> to vector<32x8xbf16>
    %c0_35 = arith.constant 0 : index
    %c24_36 = arith.constant 24 : index
    %82 = vector.load %arg8[%c0_35, %c24_36] : memref<32x32xbf16, #tpu.memory_space<vmem>>, vector<32x8xbf16>
    tpu.vector_store %arg8[%c0_35, %c24_36], %81 {strides = array<i32>} : memref<32x32xbf16, #tpu.memory_space<vmem>>, vector<32x8xbf16>,
    %c0_37 = arith.constant 0 : index
    %c0_38 = arith.constant 0 : index
    %83 = vector.load %arg8[%c0_37, %c0_38] : memref<32x32xbf16, #tpu.memory_space<vmem>>, vector<32x32xbf16>
    %c0_39 = arith.constant 0 : index
    %c0_40 = arith.constant 0 : index
    %84 = vector.load %arg4[%c0_39, %c0_40] : memref<32x32xbf16, #tpu.memory_space<vmem>>, vector<32x32xbf16>
    %cst_41 = arith.constant dense<0.000000e+00> : vector<32x32xf32>
    %85 = tpu.matmul %83, %84, %cst_41 {dimension_numbers = #tpu.dot_dimension_numbers<[1], [0], [0], [1], [0, 0, 1, 1], [], []>} : vector<32x32xbf16>, vector<32x32xbf16>, vector<32x32xf32> -> vector<32x32xf32>
    %c0_42 = arith.constant 0 : index
    %c0_43 = arith.constant 0 : index
    %86 = vector.load %arg5[%c0_42, %c0_43] : memref<1x32xf32, #tpu.memory_space<vmem>>, vector<1x32xf32>
    %87 = vector.broadcast %86 : vector<1x32xf32> to vector<32x32xf32>
    %88 = arith.addf %85, %87 : vector<32x32xf32>
    %c0_44 = arith.constant 0 : index
    %c0_45 = arith.constant 0 : index
    %c0_46 = arith.constant 0 : index
    %89 = vector.load %arg6[%c0_44, %c0_45, %c0_46] : memref<1x32x32xf32, #tpu.memory_space<vmem>>, vector<1x32x32xf32>
    %90 = vector.shape_cast %89 : vector<1x32x32xf32> to vector<32x32xf32>
    %91 = vector.shape_cast %88 : vector<32x32xf32> to vector<1x32x32xf32>
    tpu.vector_store %arg6[%c0_44, %c0_45, %c0_46], %91 {strides = array<i32>} : memref<1x32x32xf32, #tpu.memory_space<vmem>>, vector<1x32x32xf32>,
    return
  }
  func.func @transform_0(%arg0: i32, %arg1: i32) -> (i32, i32, i32) {
    %c0_i32 = arith.constant 0 : i32
    %c0_i32_0 = arith.constant 0 : i32
    %c0_i32_1 = arith.constant 0 : i32
    return %arg0, %c0_i32, %c0_i32_0 : i32, i32, i32
  }
  func.func @transform_1(%arg0: i32, %arg1: i32) -> (i32, i32) {
    %c0_i32 = arith.constant 0 : i32
    %c0_i32_0 = arith.constant 0 : i32
    %c0_i32_1 = arith.constant 0 : i32
    return %c0_i32, %c0_i32_0 : i32, i32
  }
  func.func @transform_2(%arg0: i32, %arg1: i32) -> (i32, i32) {
    %c0_i32 = arith.constant 0 : i32
    %c0_i32_0 = arith.constant 0 : i32
    %c0_i32_1 = arith.constant 0 : i32
    return %c0_i32, %c0_i32_0 : i32, i32
  }
  func.func @transform_3(%arg0: i32, %arg1: i32) -> (i32, i32) {
    %c0_i32 = arith.constant 0 : i32
    %c0_i32_0 = arith.constant 0 : i32
    %c0_i32_1 = arith.constant 0 : i32
    return %c0_i32, %c0_i32_0 : i32, i32
  }
  func.func @transform_4(%arg0: i32, %arg1: i32) -> (i32, i32, i32) {
    %c0_i32 = arith.constant 0 : i32
    %c0_i32_0 = arith.constant 0 : i32
    return %arg0, %arg1, %c0_i32 : i32, i32, i32
  }
}

module attributes {stable_mosaic.version = 11 : i64} {
  func.func @_attention_kernel(%arg0: i32, %arg1: i32, %arg2: memref<1x32x32xbf16, #tpu.memory_space<vmem>>, %arg3: memref<32x96xbf16, #tpu.memory_space<vmem>>, %arg4: memref<32x32xbf16, #tpu.memory_space<vmem>>, %arg5: memref<1x32xf32, #tpu.memory_space<vmem>>, %arg6: memref<1x32x32xf32, #tpu.memory_space<vmem>>, %arg7: memref<32x64xbf16, #tpu.memory_space<vmem>>, %arg8: memref<32x32xbf16, #tpu.memory_space<vmem>>) attributes {dimension_semantics = [#tpu.dimension_semantics<parallel>, #tpu.dimension_semantics<arbitrary>], iteration_bounds = array<i64: 2, 1>, scalar_prefetch = 0 : i64, scratch_operands = 2 : i64, tpu.core_type = #tpu.core_type<tc>, window_params = [{transform_indices = @transform_0, window_bounds = array<i64: 1, 32, 32>}, {pipeline_mode = #tpu.pipeline_mode<synchronous>, transform_indices = @transform_1, window_bounds = array<i64: 32, 96>}, {pipeline_mode = #tpu.pipeline_mode<synchronous>, transform_indices = @transform_2, window_bounds = array<i64: 32, 32>}, {pipeline_mode = #tpu.pipeline_mode<synchronous>, transform_indices = @transform_3, window_bounds = array<i64: 1, 32>}, {transform_indices = @transform_4, window_bounds = array<i64: 1, 32, 32>}]} {
    %c0_i32 = arith.constant 0 : i32
    %0 = arith.cmpi eq, %arg1, %c0_i32 : i32
    %1 = arith.extui %0 : i1 to i32
    %c0_i32_0 = arith.constant 0 : i32
    %2 = arith.cmpi ne, %1, %c0_i32_0 : i32
    scf.if %2 {
      %c0_47 = arith.constant 0 : index
      %c0_48 = arith.constant 0 : index
      %c0_49 = arith.constant 0 : index
      %92 = vector.load %arg2[%c0_47, %c0_48, %c0_49] : memref<1x32x32xbf16, #tpu.memory_space<vmem>>, vector<1x32x32xbf16>
      %93 = vector.shape_cast %92 : vector<1x32x32xbf16> to vector<32x32xbf16>
      %c0_50 = arith.constant 0 : index
      %c32_51 = arith.constant 32 : index
      %94 = vector.load %arg3[%c0_50, %c32_51] : memref<32x96xbf16, #tpu.memory_space<vmem>>, vector<32x64xbf16>
      %cst_52 = arith.constant dense<0.000000e+00> : vector<32x64xf32>
      %95 = tpu.matmul %93, %94, %cst_52 {dimension_numbers = #tpu.dot_dimension_numbers<[1], [0], [0], [1], [0, 0, 1, 1], [], []>} : vector<32x32xbf16>, vector<32x64xbf16>, vector<32x64xf32> -> vector<32x64xf32>
      %96 = arith.truncf %95 : vector<32x64xf32> to vector<32x64xbf16>
      %c0_53 = arith.constant 0 : index
      %c0_54 = arith.constant 0 : index
      %97 = vector.load %arg7[%c0_53, %c0_54] : memref<32x64xbf16, #tpu.memory_space<vmem>>, vector<32x64xbf16>
      tpu.vector_store %arg7[%c0_53, %c0_54], %96 {strides = array<i32>} : memref<32x64xbf16, #tpu.memory_space<vmem>>, vector<32x64xbf16>,
    } else {
    }
    %c32_i32 = arith.constant 32 : i32
    %3 = arith.muli %arg1, %c32_i32 : i32
    %4 = tpu.assume_multiple %3, 32 : i32
    %c0 = arith.constant 0 : index
    %5 = arith.index_cast %4 : i32 to index
    %c0_1 = arith.constant 0 : index
    %6 = vector.load %arg2[%c0, %5, %c0_1] : memref<1x32x32xbf16, #tpu.memory_space<vmem>>, vector<1x32x32xbf16>
    %7 = vector.shape_cast %6 : vector<1x32x32xbf16> to vector<32x32xbf16>
    %c0_2 = arith.constant 0 : index
    %c0_3 = arith.constant 0 : index
    %8 = vector.load %arg3[%c0_2, %c0_3] : memref<32x96xbf16, #tpu.memory_space<vmem>>, vector<32x32xbf16>
    %cst = arith.constant dense<0.000000e+00> : vector<32x32xf32>
    %9 = tpu.matmul %7, %8, %cst {dimension_numbers = #tpu.dot_dimension_numbers<[1], [0], [0], [1], [0, 0, 1, 1], [], []>} : vector<32x32xbf16>, vector<32x32xbf16>, vector<32x32xf32> -> vector<32x32xf32>
    %10 = arith.truncf %9 : vector<32x32xf32> to vector<32x32xbf16>
    %11 = vector.extract_strided_slice %10 {offsets = [0, 0], sizes = [32, 8], strides = [1, 1]} : vector<32x32xbf16> to vector<32x8xbf16>
    %c0_4 = arith.constant 0 : index
    %c0_5 = arith.constant 0 : index
    %12 = vector.load %arg7[%c0_4, %c0_5] : memref<32x64xbf16, #tpu.memory_space<vmem>>, vector<32x8xbf16>
    %c0_6 = arith.constant 0 : index
    %c32 = arith.constant 32 : index
    %13 = vector.load %arg7[%c0_6, %c32] : memref<32x64xbf16, #tpu.memory_space<vmem>>, vector<32x8xbf16>
    %cst_7 = arith.constant dense<0.000000e+00> : vector<32x32xf32>
    %14 = tpu.matmul %11, %12, %cst_7 {dimension_numbers = #tpu.dot_dimension_numbers<[1], [1], [0], [0], [0, 0, 1, 0], [], []>} : vector<32x8xbf16>, vector<32x8xbf16>, vector<32x32xf32> -> vector<32x32xf32>
    %cst_8 = arith.constant dense<0xFF800000> : vector<32xf32>
    %15 = vector.multi_reduction <maximumf>, %14, %cst_8 [1] : vector<32x32xf32> to vector<32xf32>
    %16 = vector.shape_cast %15 : vector<32xf32> to vector<32x1xf32>
    %17 = vector.broadcast %16 : vector<32x1xf32> to vector<32x32xf32>
    %18 = arith.subf %14, %17 : vector<32x32xf32>
    %19 = math.exp %18 : vector<32x32xf32>
    %cst_9 = arith.constant dense<0.000000e+00> : vector<32xf32>
    %20 = vector.multi_reduction <add>, %19, %cst_9 [1] : vector<32x32xf32> to vector<32xf32>
    %21 = vector.shape_cast %20 : vector<32xf32> to vector<32x1xf32>
    %22 = arith.truncf %19 : vector<32x32xf32> to vector<32x32xbf16>
    %cst_10 = arith.constant dense<0.000000e+00> : vector<32x8xf32>
    %23 = tpu.matmul %22, %13, %cst_10 {dimension_numbers = #tpu.dot_dimension_numbers<[1], [0], [0], [1], [0, 0, 1, 1], [], []>} : vector<32x32xbf16>, vector<32x8xbf16>, vector<32x8xf32> -> vector<32x8xf32>
    %24 = tpu.reciprocal %21 {approx = true} : vector<32x1xf32> -> vector<32x1xf32>
    %25 = vector.broadcast %24 : vector<32x1xf32> to vector<32x8xf32>
    %26 = arith.mulf %23, %25 : vector<32x8xf32>
    %27 = arith.truncf %26 : vector<32x8xf32> to vector<32x8xbf16>
    %c0_11 = arith.constant 0 : index
    %c0_12 = arith.constant 0 : index
    %28 = vector.load %arg8[%c0_11, %c0_12] : memref<32x32xbf16, #tpu.memory_space<vmem>>, vector<32x8xbf16>
    tpu.vector_store %arg8[%c0_11, %c0_12], %27 {strides = array<i32>} : memref<32x32xbf16, #tpu.memory_space<vmem>>, vector<32x8xbf16>,
    %29 = vector.extract_strided_slice %10 {offsets = [0, 8], sizes = [32, 8], strides = [1, 1]} : vector<32x32xbf16> to vector<32x8xbf16>
    %c0_13 = arith.constant 0 : index
    %c8 = arith.constant 8 : index
    %30 = vector.load %arg7[%c0_13, %c8] : memref<32x64xbf16, #tpu.memory_space<vmem>>, vector<32x8xbf16>
    %c0_14 = arith.constant 0 : index
    %c40 = arith.constant 40 : index
    %31 = vector.load %arg7[%c0_14, %c40] : memref<32x64xbf16, #tpu.memory_space<vmem>>, vector<32x8xbf16>
    %cst_15 = arith.constant dense<0.000000e+00> : vector<32x32xf32>
    %32 = tpu.matmul %29, %30, %cst_15 {dimension_numbers = #tpu.dot_dimension_numbers<[1], [1], [0], [0], [0, 0, 1, 0], [], []>} : vector<32x8xbf16>, vector<32x8xbf16>, vector<32x32xf32> -> vector<32x32xf32>
    %cst_16 = arith.constant dense<0xFF800000> : vector<32xf32>
    %33 = vector.multi_reduction <maximumf>, %32, %cst_16 [1] : vector<32x32xf32> to vector<32xf32>
    %34 = vector.shape_cast %33 : vector<32xf32> to vector<32x1xf32>
    %35 = vector.broadcast %34 : vector<32x1xf32> to vector<32x32xf32>
    %36 = arith.subf %32, %35 : vector<32x32xf32>
    %37 = math.exp %36 : vector<32x32xf32>
    %cst_17 = arith.constant dense<0.000000e+00> : vector<32xf32>
    %38 = vector.multi_reduction <add>, %37, %cst_17 [1] : vector<32x32xf32> to vector<32xf32>
    %39 = vector.shape_cast %38 : vector<32xf32> to vector<32x1xf32>
    %40 = arith.truncf %37 : vector<32x32xf32> to vector<32x32xbf16>
    %cst_18 = arith.constant dense<0.000000e+00> : vector<32x8xf32>
    %41 = tpu.matmul %40, %31, %cst_18 {dimension_numbers = #tpu.dot_dimension_numbers<[1], [0], [0], [1], [0, 0, 1, 1], [], []>} : vector<32x32xbf16>, vector<32x8xbf16>, vector<32x8xf32> -> vector<32x8xf32>
    %42 = tpu.reciprocal %39 {approx = true} : vector<32x1xf32> -> vector<32x1xf32>
    %43 = vector.broadcast %42 : vector<32x1xf32> to vector<32x8xf32>
    %44 = arith.mulf %41, %43 : vector<32x8xf32>
    %45 = arith.truncf %44 : vector<32x8xf32> to vector<32x8xbf16>
    %c0_19 = arith.constant 0 : index
    %c8_20 = arith.constant 8 : index
    %46 = vector.load %arg8[%c0_19, %c8_20] : memref<32x32xbf16, #tpu.memory_space<vmem>>, vector<32x8xbf16>
    tpu.vector_store %arg8[%c0_19, %c8_20], %45 {strides = array<i32>} : memref<32x32xbf16, #tpu.memory_space<vmem>>, vector<32x8xbf16>,
    %47 = vector.extract_strided_slice %10 {offsets = [0, 16], sizes = [32, 8], strides = [1, 1]} : vector<32x32xbf16> to vector<32x8xbf16>
    %c0_21 = arith.constant 0 : index
    %c16 = arith.constant 16 : index
    %48 = vector.load %arg7[%c0_21, %c16] : memref<32x64xbf16, #tpu.memory_space<vmem>>, vector<32x8xbf16>
    %c0_22 = arith.constant 0 : index
    %c48 = arith.constant 48 : index
    %49 = vector.load %arg7[%c0_22, %c48] : memref<32x64xbf16, #tpu.memory_space<vmem>>, vector<32x8xbf16>
    %cst_23 = arith.constant dense<0.000000e+00> : vector<32x32xf32>
    %50 = tpu.matmul %47, %48, %cst_23 {dimension_numbers = #tpu.dot_dimension_numbers<[1], [1], [0], [0], [0, 0, 1, 0], [], []>} : vector<32x8xbf16>, vector<32x8xbf16>, vector<32x32xf32> -> vector<32x32xf32>
    %cst_24 = arith.constant dense<0xFF800000> : vector<32xf32>
    %51 = vector.multi_reduction <maximumf>, %50, %cst_24 [1] : vector<32x32xf32> to vector<32xf32>
    %52 = vector.shape_cast %51 : vector<32xf32> to vector<32x1xf32>
    %53 = vector.broadcast %52 : vector<32x1xf32> to vector<32x32xf32>
    %54 = arith.subf %50, %53 : vector<32x32xf32>
    %55 = math.exp %54 : vector<32x32xf32>
    %cst_25 = arith.constant dense<0.000000e+00> : vector<32xf32>
    %56 = vector.multi_reduction <add>, %55, %cst_25 [1] : vector<32x32xf32> to vector<32xf32>
    %57 = vector.shape_cast %56 : vector<32xf32> to vector<32x1xf32>
    %58 = arith.truncf %55 : vector<32x32xf32> to vector<32x32xbf16>
    %cst_26 = arith.constant dense<0.000000e+00> : vector<32x8xf32>
    %59 = tpu.matmul %58, %49, %cst_26 {dimension_numbers = #tpu.dot_dimension_numbers<[1], [0], [0], [1], [0, 0, 1, 1], [], []>} : vector<32x32xbf16>, vector<32x8xbf16>, vector<32x8xf32> -> vector<32x8xf32>
    %60 = tpu.reciprocal %57 {approx = true} : vector<32x1xf32> -> vector<32x1xf32>
    %61 = vector.broadcast %60 : vector<32x1xf32> to vector<32x8xf32>
    %62 = arith.mulf %59, %61 : vector<32x8xf32>
    %63 = arith.truncf %62 : vector<32x8xf32> to vector<32x8xbf16>
    %c0_27 = arith.constant 0 : index
    %c16_28 = arith.constant 16 : index
    %64 = vector.load %arg8[%c0_27, %c16_28] : memref<32x32xbf16, #tpu.memory_space<vmem>>, vector<32x8xbf16>
    tpu.vector_store %arg8[%c0_27, %c16_28], %63 {strides = array<i32>} : memref<32x32xbf16, #tpu.memory_space<vmem>>, vector<32x8xbf16>,
    %65 = vector.extract_strided_slice %10 {offsets = [0, 24], sizes = [32, 8], strides = [1, 1]} : vector<32x32xbf16> to vector<32x8xbf16>
    %c0_29 = arith.constant 0 : index
    %c24 = arith.constant 24 : index
    %66 = vector.load %arg7[%c0_29, %c24] : memref<32x64xbf16, #tpu.memory_space<vmem>>, vector<32x8xbf16>
    %c0_30 = arith.constant 0 : index
    %c56 = arith.constant 56 : index
    %67 = vector.load %arg7[%c0_30, %c56] : memref<32x64xbf16, #tpu.memory_space<vmem>>, vector<32x8xbf16>
    %cst_31 = arith.constant dense<0.000000e+00> : vector<32x32xf32>
    %68 = tpu.matmul %65, %66, %cst_31 {dimension_numbers = #tpu.dot_dimension_numbers<[1], [1], [0], [0], [0, 0, 1, 0], [], []>} : vector<32x8xbf16>, vector<32x8xbf16>, vector<32x32xf32> -> vector<32x32xf32>
    %cst_32 = arith.constant dense<0xFF800000> : vector<32xf32>
    %69 = vector.multi_reduction <maximumf>, %68, %cst_32 [1] : vector<32x32xf32> to vector<32xf32>
    %70 = vector.shape_cast %69 : vector<32xf32> to vector<32x1xf32>
    %71 = vector.broadcast %70 : vector<32x1xf32> to vector<32x32xf32>
    %72 = arith.subf %68, %71 : vector<32x32xf32>
    %73 = math.exp %72 : vector<32x32xf32>
    %cst_33 = arith.constant dense<0.000000e+00> : vector<32xf32>
    %74 = vector.multi_reduction <add>, %73, %cst_33 [1] : vector<32x32xf32> to vector<32xf32>
    %75 = vector.shape_cast %74 : vector<32xf32> to vector<32x1xf32>
    %76 = arith.truncf %73 : vector<32x32xf32> to vector<32x32xbf16>
    %cst_34 = arith.constant dense<0.000000e+00> : vector<32x8xf32>
    %77 = tpu.matmul %76, %67, %cst_34 {dimension_numbers = #tpu.dot_dimension_numbers<[1], [0], [0], [1], [0, 0, 1, 1], [], []>} : vector<32x32xbf16>, vector<32x8xbf16>, vector<32x8xf32> -> vector<32x8xf32>
    %78 = tpu.reciprocal %75 {approx = true} : vector<32x1xf32> -> vector<32x1xf32>
    %79 = vector.broadcast %78 : vector<32x1xf32> to vector<32x8xf32>
    %80 = arith.mulf %77, %79 : vector<32x8xf32>
    %81 = arith.truncf %80 : vector<32x8xf32> to vector<32x8xbf16>
    %c0_35 = arith.constant 0 : index
    %c24_36 = arith.constant 24 : index
    %82 = vector.load %arg8[%c0_35, %c24_36] : memref<32x32xbf16, #tpu.memory_space<vmem>>, vector<32x8xbf16>
    tpu.vector_store %arg8[%c0_35, %c24_36], %81 {strides = array<i32>} : memref<32x32xbf16, #tpu.memory_space<vmem>>, vector<32x8xbf16>,
    %c0_37 = arith.constant 0 : index
    %c0_38 = arith.constant 0 : index
    %83 = vector.load %arg8[%c0_37, %c0_38] : memref<32x32xbf16, #tpu.memory_space<vmem>>, vector<32x32xbf16>
    %c0_39 = arith.constant 0 : index
    %c0_40 = arith.constant 0 : index
    %84 = vector.load %arg4[%c0_39, %c0_40] : memref<32x32xbf16, #tpu.memory_space<vmem>>, vector<32x32xbf16>
    %cst_41 = arith.constant dense<0.000000e+00> : vector<32x32xf32>
    %85 = tpu.matmul %83, %84, %cst_41 {dimension_numbers = #tpu.dot_dimension_numbers<[1], [0], [0], [1], [0, 0, 1, 1], [], []>} : vector<32x32xbf16>, vector<32x32xbf16>, vector<32x32xf32> -> vector<32x32xf32>
    %c0_42 = arith.constant 0 : index
    %c0_43 = arith.constant 0 : index
    %86 = vector.load %arg5[%c0_42, %c0_43] : memref<1x32xf32, #tpu.memory_space<vmem>>, vector<1x32xf32>
    %87 = vector.broadcast %86 : vector<1x32xf32> to vector<32x32xf32>
    %88 = arith.addf %85, %87 : vector<32x32xf32>
    %c0_44 = arith.constant 0 : index
    %c0_45 = arith.constant 0 : index
    %c0_46 = arith.constant 0 : index
    %89 = vector.load %arg6[%c0_44, %c0_45, %c0_46] : memref<1x32x32xf32, #tpu.memory_space<vmem>>, vector<1x32x32xf32>
    %90 = vector.shape_cast %89 : vector<1x32x32xf32> to vector<32x32xf32>
    %91 = vector.shape_cast %88 : vector<32x32xf32> to vector<1x32x32xf32>
    tpu.vector_store %arg6[%c0_44, %c0_45, %c0_46], %91 {strides = array<i32>} : memref<1x32x32xf32, #tpu.memory_space<vmem>>, vector<1x32x32xf32>,
    return
  }
  func.func @transform_0(%arg0: i32, %arg1: i32) -> (i32, i32, i32) {
    %c0_i32 = arith.constant 0 : i32
    %c0_i32_0 = arith.constant 0 : i32
    %c0_i32_1 = arith.constant 0 : i32
    return %arg0, %c0_i32, %c0_i32_0 : i32, i32, i32
  }
  func.func @transform_1(%arg0: i32, %arg1: i32) -> (i32, i32) {
    %c0_i32 = arith.constant 0 : i32
    %c0_i32_0 = arith.constant 0 : i32
    %c0_i32_1 = arith.constant 0 : i32
    return %c0_i32, %c0_i32_0 : i32, i32
  }
  func.func @transform_2(%arg0: i32, %arg1: i32) -> (i32, i32) {
    %c0_i32 = arith.constant 0 : i32
    %c0_i32_0 = arith.constant 0 : i32
    %c0_i32_1 = arith.constant 0 : i32
    return %c0_i32, %c0_i32_0 : i32, i32
  }
  func.func @transform_3(%arg0: i32, %arg1: i32) -> (i32, i32) {
    %c0_i32 = arith.constant 0 : i32
    %c0_i32_0 = arith.constant 0 : i32
    %c0_i32_1 = arith.constant 0 : i32
    return %c0_i32, %c0_i32_0 : i32, i32
  }
  func.func @transform_4(%arg0: i32, %arg1: i32) -> (i32, i32, i32) {
    %c0_i32 = arith.constant 0 : i32
    %c0_i32_0 = arith.constant 0 : i32
    return %arg0, %arg1, %c0_i32 : i32, i32, i32
  }
}

</mosaic_0001>

<bundles_post_ra>
// kernel: tpu_custom_call.1
= control target key start
LH: loop header
LB: loop body
LE: loop exit
PB: predicated region body
PF: predicated region fallthrough
CT: control target
= control target key end

     0   :  { %9 = vsyncpa [#allocation5], 0  ;;  %s2569_s0 = inlined_call_operand.hbm [shape: bf16[2,32,32], index: 0, kind: input, shape index: {}]   ;;  %s2570_s1 = inlined_call_operand.hbm [shape: bf16[32,96], index: 1, kind: input, shape index: {}]   ;;  %s2571_s2 = inlined_call_operand.hbm [shape: bf16[32,32], index: 2, kind: input, shape index: {}]   ;;  %s2572_s3 = inlined_call_operand.vmem [shape: f32[1,32], index: 3, kind: input, shape index: {}]   ;;  %s2573_s4 = inlined_call_operand.hbm [shape: f32[2,32,32], index: 4, kind: output, shape index: {}]  }
   0x1   :  { %11 = vsyncpa [#allocation5 + $0x1], 0 }
   0x2   :  { %12 = vsyncpa [#allocation8], 0 }
   0x3   :  { %13 = vsyncpa [#allocation6], 0 }
   0x4   :  { %15 = vsyncpa [#allocation6 + $0x1], 0  ;;  %s2181_s15 = smov 0   ;;  %s2183_s16 = smov 0  }
   0x5   :  { %s2185_s17 = smov 0   ;;  %s2187_s18 = smov 0  }
   0x6   :  { %s2189_s19 = smov 0   ;;  %s2191_s20 = smov 0  }
   0x7 LB: > { %s1549_s21 = sadd.s32 4294967295, %s2137_s20   ;;  %s1550_s22 = sadd.s32 4294967294, %s2137_s20   ;;  %s2137_s20 = sphi %s2191_s20, %s21_s20   ;;  %s2133_s19 = sphi %s2189_s19, %s2592_s19   ;;  %s2129_s18 = sphi %s2187_s18, %s2591_s18   ;;  %s2125_s17 = sphi %s2185_s17, %s2590_s17   ;;  %s2121_s16 = sphi %s2183_s16, %s2589_s16   ;;  %s2117_s15 = sphi %s2181_s15, %s2588_s15  }
   0x8   : > { %p53_p0 = scmp.ne.s32.totalorder %s2121_s16, %s2117_s15  ;;  %p2215_p1 = scmp.eq.s32.totalorder %s1549_s21, 0 }
   0x9   : > { %p2219_p2 = scmp.eq.s32.totalorder %s1549_s21, 1  ;;  %p148_p3 = scmp.eq.s32.totalorder %s1550_s22, 1 }
   0xa   : > { %p2225_p4 = por %p2215_p1, %p53_p0  ;;  %p1551_p5 = scmp.ge.s32.totalorder %s2137_s20, 1 }
   0xb   : > { %p2230_p6 = por %p148_p3, %p53_p0  ;;  %p155_p7 = scmp.lt.s32.totalorder %s2137_s20, 3 }
   0xc   : > { %s2139_s28 = smov [#allocation7]   ;;  %s2140_s5 = smov [#allocation9]  }
   0xd   : > { %s2579_s26 = scalar_select %p2230_p6, 1, 0 }
   0xe   : > { %p2235_p8 = pnand %p1551_p5, %p155_p7  ;;  %s167_s29 = sshll.u32 %s2139_s28, 4  ;;  %s168_s29 = int_to_ptr.vmem [resolvable:$true] %s167_s29 }
   0xf   : > { %s180_s6 = sshll.u32 %s2140_s5, 4  ;;  %s1984_s7 = scalar_lea.vmem %s168_s29, 256  ;;  %s181_s6 = int_to_ptr.vmem [resolvable:$true] %s180_s6 }
  0x10   : > { %p1805_p9 = pneg %p2235_p8  ;;  %p1985_p13 = scmp.ne.s32.totalorder %s168_s29, %s1984_s7 }
  0x11   : > { %p1992_p5 = scmp.lt.s32.totalorder %s168_s29, %s168_s29  ;;  %p1993_p7 = scmp.lt.s32.totalorder %s1984_s7, %s1984_s7 }
  0x12   : > { %p2244_p11 = pnand %p1805_p9, %p2215_p1 }
  0x13   : > { %p1994_p10 = por %p1993_p7, %p1992_p5 }
  0x14   : > { %p1975_p12 = pneg %p2244_p11 }
  0x16   : > { %p1987_p0 = pnand %p1985_p13, %p1975_p12 }
  0x18   : > { %p1988_p3 = pneg %p1987_p0 }
  0x1a   : > { %p1995_p9 = pnand %p1994_p10, %p1988_p3 }
  0x1c   : > { %1998 = shalt.err (!%p1995_p9)
}
  0x1d   : > { %s2574_s8 = smov 64   ;;  %s2575_s9 = smov 4  }
  0x1e   : > { %1808 = dma.hbm_to_vmem [thread:$0]  (!%p2244_p11), %s2570_s1, 256, %s168_s29, [#allocation8], %s2574_s8, %s2574_s8, %s2575_s9  }
  0x1f   : > { %s2010_s12 = scalar_lea.vmem %s181_s6, 256  ;;  %p2018_p10 = scmp.lt.s32.totalorder %s181_s6, %s181_s6 }
  0x20   : > { %p2011_p13 = scmp.ne.s32.totalorder %s181_s6, %s2010_s12  ;;  %p2019_p3 = scmp.lt.s32.totalorder %s2010_s12, %s2010_s12 }
  0x22   : > { %p2013_p0 = pnand %p2011_p13, %p1975_p12  ;;  %p2020_p7 = por %p2019_p3, %p2018_p10 }
  0x24   : > { %p2014_p5 = pneg %p2013_p0 }
  0x26   : > { %p2021_p9 = pnand %p2020_p7, %p2014_p5 }
  0x28   : > { %2024 = shalt.err (!%p2021_p9)
}
  0x29   : > { %1811 = dma.hbm_to_vmem [thread:$0]  (!%p2244_p11), %s2571_s2, 256, %s181_s6, [#allocation8], %s2574_s8, %s2574_s8, %s2575_s9  }
  0x2a   : > { %s33_s21 = sadd.s32 1, %s2133_s19  ;;  %s40_s22 = sadd.s32 1, %s2125_s17 }
  0x2b   : > { %p35_p12 = scmp.ge.s32.totalorder %s33_s21, 2  ;;  %p47_p13 = scmp.ne.s32.totalorder %s2125_s17, %s2121_s16 }
  0x2c   : > { %p48_p0 = scmp.eq.s32.totalorder %s2137_s20, 0  ;;  %p1822_p5 = scmp.lt.s32.totalorder %s2137_s20, 2 }
  0x2d   : > { %s2594_s21 = smov (%p35_p12, %s33_s21), 0  ;;  %p2282_p3 = por %p2219_p2, %p47_p13 }
  0x2e   : > { %p49_p10 = por %p48_p0, %p47_p13  ;;  %s37_s29 = ssub.s32 %s2133_s19, %s2594_s21 }
  0x2f   : > { %s197_s30 = sand.u32 1, %s2125_s17   ;;  %p38_p7 = scmp.eq.s32.totalorder %s37_s29, 0 }
  0x30   : > { %s1555_s5 = sshll.u32 %s197_s30, 4  ;;  %s1631_s6 = sshll.u32 %s2133_s19, 8 }
  0x31   : > { %s2291_s7 = scalar_select %p38_p7, %s2125_s17, %s40_s22  }
  0x32   : > { %s207_s12 = scalar_lea.hbm %s2569_s0, %s1631_s6  ;;  %s201_s13 = scalar_lea.vmem [#allocation4], %s1555_s5 }
  0x33   : > { %s208_s14 = sshll.u32 %s201_s13, 4  ;;  %p2298_p11 = pnand %p1822_p5, %p49_p10  ;;  %s209_s14 = int_to_ptr.vmem [resolvable:$true] %s208_s14 }
  0x34   : > { %s198_s8 = scalar_lea.sflag [#allocation5], %s197_s30  ;;  %s2038_s29 = scalar_lea.vmem %s209_s14, 256 }
  0x35   : > { %p2027_p2 = pneg %p2298_p11  ;;  %p2039_p9 = scmp.ne.s32.totalorder %s209_s14, %s2038_s29 }
  0x36   : > { %s2143_s22 = smov [#allocation4]  }
  0x37   : > { %p2041_p12 = pnand %p2039_p9, %p2027_p2  ;;  %s2043_s9 = sshll.u32 %s2143_s22, 4  ;;  %s2044_s9 = int_to_ptr.vmem [resolvable:$false] %s2043_s9 }
  0x38   : > { %s2045_s6 = scalar_lea.vmem %s2044_s9, 512  ;;  %p2046_p0 = scmp.lt.s32.totalorder %s209_s14, %s2044_s9 }
  0x39   : > { %p2042_p13 = pneg %p2041_p12  ;;  %p2047_p7 = scmp.lt.s32.totalorder %s2045_s6, %s2038_s29 }
  0x3b   : > { %p2048_p6 = por %p2047_p7, %p2046_p0 }
  0x3d   : > { %p2049_p5 = pnand %p2048_p6, %p2042_p13 }
  0x3f   : > { %2052 = shalt.err (!%p2049_p5)
}
  0x40   : > { %s2584_s5 = smov 4   ;;  %s2585_s10 = smov 64  }
  0x41   : > { %1815 = dma.hbm_to_vmem [thread:$0]  (!%p2298_p11), %s207_s12, 256, %s209_s14, %s198_s8, %s2585_s10, %s2585_s10, %s2584_s5  }
  0x42   : > { %220 = sbr.rel (%p2235_p8) target bundleno = 2457 (0x999), region = 36  ;;  %s2312_s30 = sand.u32 (!%p2235_p8), 1, %s2121_s16  }
  0x43   : > { %s1559_s9 = sshll.u32 (!%p2235_p8), %s2312_s30, 4  ;;  %s223_s11 = scalar_lea.sflag (!%p2235_p8), [#allocation5], %s2312_s30 }
  0x44   : > { %s226_s13 = scalar_lea.vmem (!%p2235_p8), [#allocation4], %s1559_s9 }
  0x47   : > { %2104 = dma.done.wait (%p2225_p4), %s223_s11, 256  }
  0x48   : > { %2106 = vsyncadd (%p2225_p4), %s223_s11, 4294967040 }
  0x49   : > { %2108 = dma.done.wait (%p2215_p1), [#allocation8], 512  }
  0x4a   : > { %2110 = vsyncadd (%p2215_p1), [#allocation8], 4294966784  ;;  %v1889_v0 = vld [vmem:[#allocation7 + $0x8] sm:$0xff]   ;;  %v1890_v1 = vld [vmem:[#allocation7] sm:$0xff]   ;;  %vm299_vm0 = vcmask 261120   ;;  %s2144_s27 = smov 96  }
  0x4b   : > { %295 = vrot.lane.b32.xlu0 %v1889_v0, %s2144_s27  ;;  %v1891_v2 = vld [vmem:[%s226_s13] sm:$0xff]   ;;  %v1893_v3 = vld [vmem:[#allocation7 + $0x8] sm:$0xff]   ;;  %vm483_vm1 = vcmask 64512   ;;  %vm371_vm2 = vcmask 519168   ;;  %s2145_s23 = smov 120   ;;  %s2146_s25 = smov 88  }
  0x4c   : > { %1701 = vmatprep.mubr.msk.bf16.mxu0 %vm299_vm0, %v1891_v2  ;;  %v1894_v4 = vld [vmem:[#allocation7] sm:$0xff]   ;;  %1705 = vmatprep.subr.bf16.mxu1 %v1893_v3  ;;  %v1896_v6 = vld [vmem:[%s226_s13 + $0x8] sm:$0xff]   ;;  %s2147_s8 = smov 112   ;;  %s2148_s12 = smov 80   ;;  %vm668_vm3 = vcmask 60416   ;;  %vm889_vm4 = vcmask 126016  }
  0x4d   : > { %v1895_v5 = vld [vmem:[%s226_s13] sm:$0xff]   ;;  %1706 = vmatpush3.bf16.msra.mxu1 %v1893_v3  ;;  %v1892_v9 = vld [vmem:[%s226_s13 + $0x8] sm:$0xff]   ;;  %s2149_s14 = smov 104   ;;  %s2150_s24 = smov 72   ;;  %vm1108_vm5 = vcmask 191616   ;;  %vm1327_vm6 = vcmask 257216  }
  0x4e   : > { %1707 = vmatprep.subr.bf16.mxu1 %v1894_v4  ;;  %1709 = vmatprep.mubr.msk.bf16.mxu1 %vm299_vm0, %v1895_v5  ;;  %s2151_s29 = smov 8   ;;  %s2152_s22 = smov 16  }
  0x4f   : > { %293 = vrot.lane.b32.xlu0 %v1890_v1, %s2144_s27  ;;  %s2153_s6 = smov 24   ;;  %s1562_s5 = sshll.u32 %s2312_s30, 5 }
  0x50   : > { %s258_s11 = scalar_lea.vmem [#allocation10], %s1562_s5 }
  0x51   : > { %1708 = vmatpush3.bf16.msra.mxu1 %v1894_v4  ;;  %s1444_s13 = sshll.u32 %s258_s11, 4  ;;  %s2513_s13 = int_to_ptr.vmem [resolvable:$true] %s1444_s13 }
  0x54   : > { %1710 = vmatmul.mubr.msk.bf16.vlgmr.msra.gmra.mxu1 %vm299_vm0, %v1896_v6 }
  0xbd   : > { %v296_v7 = vpop.permute.xlu0 %295 }
  0xbe   : > { %1697 = vmatprep.subr.bf16.mxu0 %v296_v7 }
  0xbf   : > { %1698 = vmatpush3.bf16.msra.mxu0 %v296_v7 }
  0xc1   : > { %v294_v8 = vpop.permute.xlu0 %293 }
  0xc2   : > { %1699 = vmatprep.subr.bf16.mxu0 %v294_v8 }
  0xc3   : > { %1700 = vmatpush3.bf16.msra.mxu0 %v294_v8 }
  0xc6   : > { %1702 = vmatmul.mubr.msk.bf16.vlgmr.msra.gmra.mxu0 %vm299_vm0, %v1892_v9 }
 0x114   : > { %v1711_v10 = vpop.f32.mrf.mxu1 }
 0x116   : > { %v452_v11 = vpop.f32.mrf.mxu1 }
 0x118   : > { %v1712_v12 = vpop.f32.mrf.mxu1 }
 0x119   : > { %v2330_v13 = vpack.c.bf16 %v1712_v12, %v1711_v10 }
 0x11a   : > { %v455_v14 = vpop.f32.mrf.mxu1 }
 0x11b   : > { %v2332_v15 = vpack.c.bf16 %v455_v14, %v452_v11 }
 0x11d   : > { %1717 = vmatprep.mubr.msk.bf16.mxu0 %vm483_vm1, %v2332_v15 }
 0x186   : > { %v1703_v16 = vpop.f32.mrf.mxu0 }
 0x187   : > { %v1634_v17 = vpack.c.bf16 %v1703_v16, %v1703_v16 }
 0x188   : > { %v340_v18 = vpop.f32.mrf.mxu0 }
 0x189   : > { %374 = vst.msk [vmem:[#allocation2 + $0x8] sm:$0xf] %vm371_vm2, %v1634_v17  ;;  %v1632_v19 = vpack.c.bf16 %v340_v18, %v340_v18 }
 0x18a   : > { %v1704_v20 = vpop.f32.mrf.mxu0 }
 0x18b   : > { %372 = vst.msk [vmem:[#allocation2] sm:$0xf] %vm371_vm2, %v1632_v19  ;;  %v1635_v21 = vpack.c.bf16 %v1704_v20, %v1704_v20 }
 0x18c   : > { %v343_v22 = vpop.f32.mrf.mxu0 }
 0x18d   : > { %375 = vst.msk [vmem:[#allocation2 + $0xc] sm:$0xf] %vm371_vm2, %v1635_v21  ;;  %v1633_v23 = vpack.c.bf16 %v343_v22, %v343_v22 }
 0x18f   : > { %373 = vst.msk [vmem:[#allocation2 + $0x4] sm:$0xf] %vm371_vm2, %v1633_v23 }
 0x194   : > { %v1897_v24 = vld [vmem:[#allocation2 + $0x8] sm:$0xff]  }
 0x195   : > { %585 = vrot.lane.b32.xlu1 %v1897_v24, %s2144_s27  ;;  %1785 = vmatprep.subr.msk.bf16.mxu0 %vm483_vm1, %v1897_v24  ;;  %v494_v25 = vsel %vm483_vm1, %v1897_v24, 0  ;;  %v1899_v38 = vld [vmem:[#allocation2 + $0x8] sm:$0xff]  }
 0x196   : > { %v1898_v26 = vld [vmem:[#allocation2] sm:$0xff]   ;;  %1714 = vmatpush3.bf16.xpose.msra.mxu0 %v494_v25  ;;  %v1901_v14 = vld [vmem:[#allocation2 + $0x8] sm:$0xff]  }
 0x197   : > { %1786 = vmatprep.subr.msk.bf16.mxu0 %vm483_vm1, %v1898_v26  ;;  %v491_v27 = vsel %vm483_vm1, %v1898_v26, 0  ;;  %v2349_v39 = vld [vmem:[#allocation2] sm:$0xff]  }
 0x198   : > { %v2386_v16 = vld [vmem:[#allocation2] sm:$0xff]  }
 0x199   : > { %583 = vrot.lane.b32.xlu1 %v1898_v26, %s2144_s27  ;;  %s1652_s27 = sshll.u32 %s2129_s18, 9  ;;  %s1429_s18 = scalar_lea.sflag [#allocation6], %s2312_s30 }
 0x19e   : > { %1716 = vmatpush3.bf16.xpose.msra.mxu0 %v491_v27 }
 0x1a5   : > { %1718 = vmatmul.mubr.msk.bf16.vlgmr.msra.gmra.mxu0 %vm483_vm1, %v2330_v13 }
 0x207   : > { %v586_v28 = vpop.permute.xlu1 %585 }
 0x208   : > { %1721 = vmatprep.subr.bf16.mxu1 %v586_v28 }
 0x209   : > { %1722 = vmatpush3.bf16.msra.mxu1 %v586_v28 }
 0x20b   : > { %v584_v29 = vpop.permute.xlu1 %583 }
 0x20c   : > { %1723 = vmatprep.subr.bf16.mxu1 %v584_v29 }
 0x20d   : > { %1724 = vmatpush3.bf16.msra.mxu1 %v584_v29 }
 0x265   : > { %v1719_v30 = vpop.f32.mrf.mxu0 }
 0x266   : > { %v551_v31 = vsel %vm299_vm0, %v1719_v30, -inf }
 0x267   : > { %552 = vmax.xlane.f32.xlu0 %v551_v31  ;;  %v530_v32 = vpop.f32.mrf.mxu0 }
 0x268   : > { %v545_v33 = vsel %vm299_vm0, %v530_v32, -inf }
 0x269   : > { %546 = vmax.xlane.f32.xlu1 %v545_v33  ;;  %v1720_v34 = vpop.f32.mrf.mxu0 }
 0x26a   : > { %v554_v35 = vsel %vm299_vm0, %v1720_v34, -inf }
 0x26b   : > { %v533_v36 = vpop.f32.mrf.mxu0 }
 0x26c   : > { %v548_v37 = vsel %vm299_vm0, %v533_v36, -inf }
 0x26d   : > { %555 = vmax.xlane.f32.xlu1 %v554_v35 }
 0x271   : > { %549 = vmax.xlane.f32.xlu1 %v548_v37 }
 0x27d   : > { %679 = vrot.lane.b32.xlu0 %v2332_v15, %s2145_s23 }
 0x282   : > { %695 = vrot.lane.b32.xlu1 %v1899_v38, %s2145_s23 }
 0x286   : > { %693 = vrot.lane.b32.xlu1 %v2349_v39, %s2145_s23 }
 0x28a   : > { %681 = vrot.lane.b32.xlu1 %v2330_v13, %s2145_s23 }
 0x28e   : > { %798 = vrot.lane.b32.xlu1 %v1899_v38, %s2146_s25 }
 0x2f0   : > { %v553_v41 = vpop.xlane.xlu0 %552 }
 0x2f1   : > { %v559_v45 = vsub.f32 %v1719_v30, %v553_v41 }
 0x2f2   : > { %v547_v40 = vpop.xlane.xlu1 %546 }
 0x2f3   : > { %v557_v42 = vsub.f32 %v530_v32, %v547_v40  ;;  %v565_v50 = vmul.f32 1.442695, %v559_v45 }
 0x2f4   : > { %v680_v62 = vpop.permute.xlu0 %679 }
 0x2f5   : > { %v561_v46 = vmul.f32 1.442695, %v557_v42 }
 0x2f6   : > { %v556_v43 = vpop.xlane.xlu1 %555 }
 0x2f7   : > { %v560_v44 = vsub.f32 %v1720_v34, %v556_v43  ;;  %1909 = vpow2.f32 %v561_v46 }
 0x2f9   : > { %v567_v47 = vmul.f32 1.442695, %v560_v44 }
 0x2fa   : > { %v550_v48 = vpop.xlane.xlu1 %549 }
 0x2fb   : > { %v558_v49 = vsub.f32 %v533_v36, %v550_v48  ;;  %1911 = vpow2.f32 %v567_v47 }
 0x2fd   : > { %v563_v51 = vmul.f32 1.442695, %v558_v49 }
 0x2fe   : > { %v696_v52 = vpop.permute.xlu1 %695 }
 0x2ff   : > { %1913 = vpow2.f32 %v563_v51  ;;  %1787 = vmatprep.subr.msk.bf16.mxu1 %vm483_vm1, %v696_v52  ;;  %v707_v63 = vsel %vm483_vm1, %v696_v52, 0 }
 0x300   : > { %1915 = vpow2.f32 %v565_v50 }
 0x302   : > { %v694_v53 = vpop.permute.xlu1 %693 }
 0x303   : > { %v704_v0 = vsel %vm483_vm1, %v694_v53, 0 }
 0x304   : > { %v2355_v55 = vpop.eup %1909 }
 0x306   : > { %v682_v54 = vpop.permute.xlu1 %681 }
 0x308   : > { %v2357_v57 = vpop.eup %1911 }
 0x30a   : > { %v799_v56 = vpop.permute.xlu1 %798 }
 0x30b   : > { %1737 = vmatprep.subr.bf16.mxu0 %v799_v56 }
 0x30c   : > { %v2359_v58 = vpop.eup %1913  ;;  %1738 = vmatpush3.bf16.msra.mxu0 %v799_v56  ;;  %v2426_v56 = vld [vmem:[#allocation2 + $0x8] sm:$0xff]  }
 0x30d   : > { %v2361_v59 = vpop.eup %1915  ;;  %v581_v60 = vpack.c.bf16 %v2359_v58, %v2355_v55 }
 0x30e   : > { %v582_v61 = vpack.c.bf16 %v2357_v57, %v2361_v59 }
 0x30f   : > { %1725 = vmatprep.mubr.msk.bf16.mxu1 %vm299_vm0, %v581_v60  ;;  %v1904_v60 = vld [vmem:[#allocation2] sm:$0xff]  }
 0x310   : > { %1726 = vmatmul.mubr.msk.bf16.vlgmr.msra.gmra.mxu1 %vm299_vm0, %v582_v61 }
 0x311   : > { %1730 = vmatpush3.bf16.xpose.msra.mxu1 %v707_v63  ;;  %1733 = vmatprep.mubr.msk.bf16.mxu1 %vm483_vm1, %v680_v62 }
 0x312   : > { %1788 = vmatprep.subr.msk.bf16.mxu1 %vm483_vm1, %v694_v53 }
 0x319   : > { %1732 = vmatpush3.bf16.xpose.msra.mxu1 %v704_v0 }
 0x320   : > { %1734 = vmatmul.mubr.msk.bf16.vlgmr.msra.gmra.mxu1 %vm483_vm1, %v682_v54 }
 0x3d0   : > { %v2374_v1 = vpop.f32.mrf.mxu1 }
 0x3d2   : > { %v2376_v2 = vpop.f32.mrf.mxu1 }
 0x3d4   : > { %v2378_v3 = vpop.f32.mrf.mxu1 }
 0x3d6   : > { %v2380_v4 = vpop.f32.mrf.mxu1 }
 0x3e0   : > { %v1735_v5 = vpop.f32.mrf.mxu1 }
 0x3e1   : > { %v764_v6 = vsel %vm299_vm0, %v1735_v5, -inf }
 0x3e2   : > { %765 = vmax.xlane.f32.xlu1 %v764_v6  ;;  %v743_v7 = vpop.f32.mrf.mxu1 }
 0x3e3   : > { %v758_v9 = vsel %vm299_vm0, %v743_v7, -inf }
 0x3e4   : > { %v1736_v8 = vpop.f32.mrf.mxu1 }
 0x3e5   : > { %v767_v12 = vsel %vm299_vm0, %v1736_v8, -inf }
 0x3e6   : > { %759 = vmax.xlane.f32.xlu1 %v758_v9  ;;  %v746_v10 = vpop.f32.mrf.mxu1 }
 0x3e7   : > { %v761_v11 = vsel %vm299_vm0, %v746_v10, -inf }
 0x3e8   : > { %762 = vmax.xlane.f32.xlu0 %v761_v11 }
 0x3ea   : > { %768 = vmax.xlane.f32.xlu1 %v767_v12 }
 0x3fb   : > { %914 = vrot.lane.b32.xlu1 %v1901_v14, %s2147_s8 }
 0x3fe   : > { %796 = vrot.lane.b32.xlu0 %v2349_v39, %s2146_s25 }
 0x3ff   : > { %912 = vrot.lane.b32.xlu1 %v2386_v16, %s2147_s8 }
 0x402   : > { %898 = vrot.lane.b32.xlu0 %v2332_v15, %s2147_s8 }
 0x403   : > { %900 = vrot.lane.b32.xlu1 %v2330_v13, %s2147_s8  ;;  %s2519_s8 = scalar_lea.hbm %s2573_s4, %s1652_s27 }
 0x407   : > { %1017 = vrot.lane.b32.xlu1 %v1901_v14, %s2148_s12 }
 0x46b   : > { %v766_v17 = vpop.xlane.xlu1 %765 }
 0x46c   : > { %v772_v18 = vsub.f32 %v1735_v5, %v766_v17 }
 0x46e   : > { %v778_v24 = vmul.f32 1.442695, %v772_v18 }
 0x46f   : > { %v760_v19 = vpop.xlane.xlu1 %759 }
 0x470   : > { %v770_v20 = vsub.f32 %v743_v7, %v760_v19 }
 0x471   : > { %v763_v21 = vpop.xlane.xlu0 %762 }
 0x472   : > { %v774_v22 = vmul.f32 1.442695, %v770_v20  ;;  %v771_v23 = vsub.f32 %v746_v10, %v763_v21 }
 0x473   : > { %v769_v25 = vpop.xlane.xlu1 %768 }
 0x474   : > { %v776_v26 = vmul.f32 1.442695, %v771_v23  ;;  %v773_v27 = vsub.f32 %v1736_v8, %v769_v25  ;;  %1917 = vpow2.f32 %v774_v22 }
 0x475   : > { %v797_v28 = vpop.permute.xlu0 %796 }
 0x476   : > { %1919 = vpow2.f32 %v776_v26  ;;  %v780_v29 = vmul.f32 1.442695, %v773_v27  ;;  %1739 = vmatprep.subr.bf16.mxu0 %v797_v28 }
 0x477   : > { %1921 = vpow2.f32 %v778_v24  ;;  %1740 = vmatpush3.bf16.msra.mxu0 %v797_v28  ;;  %v915_v30 = vpop.permute.xlu1 %914 }
 0x478   : > { %1923 = vpow2.f32 %v780_v29  ;;  %1789 = vmatprep.subr.msk.bf16.mxu0 %vm483_vm1, %v915_v30  ;;  %v926_v40 = vsel %vm483_vm1, %v915_v30, 0 }
 0x479   : > { %v899_v41 = vpop.permute.xlu0 %898 }
 0x47b   : > { %v913_v31 = vpop.permute.xlu1 %912 }
 0x47c   : > { %v923_v42 = vsel %vm483_vm1, %v913_v31, 0 }
 0x47f   : > { %v901_v32 = vpop.permute.xlu1 %900 }
 0x481   : > { %v2395_v33 = vpop.eup %1917 }
 0x483   : > { %v2397_v34 = vpop.eup %1919  ;;  %v1018_v35 = vpop.permute.xlu1 %1017 }
 0x484   : > { %v2399_v36 = vpop.eup %1921  ;;  %1753 = vmatprep.subr.bf16.mxu1 %v1018_v35  ;;  %v794_v37 = vpack.c.bf16 %v2397_v34, %v2395_v33 }
 0x485   : > { %v2403_v38 = vpop.eup %1923  ;;  %1754 = vmatpush3.bf16.msra.mxu1 %v1018_v35 }
 0x486   : > { %1741 = vmatprep.mubr.msk.bf16.mxu0 %vm299_vm0, %v794_v37  ;;  %v795_v39 = vpack.c.bf16 %v2403_v38, %v2399_v36 }
 0x488   : > { %1742 = vmatmul.mubr.msk.bf16.vlgmr.msra.gmra.mxu0 %vm299_vm0, %v795_v39 }
 0x489   : > { %1746 = vmatpush3.bf16.xpose.msra.mxu0 %v926_v40  ;;  %1749 = vmatprep.mubr.msk.bf16.mxu0 %vm483_vm1, %v899_v41 }
 0x48a   : > { %1790 = vmatprep.subr.msk.bf16.mxu0 %vm483_vm1, %v913_v31 }
 0x491   : > { %1748 = vmatpush3.bf16.xpose.msra.mxu0 %v923_v42  ;;  %v782_v42 = vsel %vm299_vm0, %v2395_v33, 0.0 }
 0x498   : > { %1750 = vmatmul.mubr.msk.bf16.vlgmr.msra.gmra.mxu0 %vm483_vm1, %v901_v32 }
 0x548   : > { %v2414_v43 = vpop.f32.mrf.mxu0 }
 0x54a   : > { %v2416_v44 = vpop.f32.mrf.mxu0 }
 0x54c   : > { %v2418_v45 = vpop.f32.mrf.mxu0 }
 0x54e   : > { %v2420_v46 = vpop.f32.mrf.mxu0 }
 0x558   : > { %v1751_v47 = vpop.f32.mrf.mxu0 }
 0x559   : > { %v983_v48 = vsel %vm299_vm0, %v1751_v47, -inf }
 0x55a   : > { %984 = vmax.xlane.f32.xlu0 %v983_v48  ;;  %v962_v49 = vpop.f32.mrf.mxu0  ;;  %v788_v48 = vsel %vm299_vm0, %v2399_v36, 0.0 }
 0x55b   : > { %v977_v51 = vsel %vm299_vm0, %v962_v49, -inf }
 0x55c   : > { %v1752_v50 = vpop.f32.mrf.mxu0 }
 0x55d   : > { %v986_v54 = vsel %vm299_vm0, %v1752_v50, -inf }
 0x55e   : > { %978 = vmax.xlane.f32.xlu0 %v977_v51  ;;  %v965_v52 = vpop.f32.mrf.mxu0 }
 0x55f   : > { %v980_v53 = vsel %vm299_vm0, %v965_v52, -inf }
 0x560   : > { %981 = vmax.xlane.f32.xlu1 %v980_v53 }
 0x562   : > { %987 = vmax.xlane.f32.xlu0 %v986_v54 }
 0x571   : > { %1133 = vrot.lane.b32.xlu1 %v2426_v56, %s2149_s14 }
 0x575   : > { %1131 = vrot.lane.b32.xlu1 %v1904_v60, %s2149_s14 }
 0x578   : > { %1015 = vrot.lane.b32.xlu0 %v2386_v16, %s2148_s12  ;;  %s2053_s12 = scalar_lea.vmem %s2513_s13, 512 }
 0x579   : > { %1119 = vrot.lane.b32.xlu1 %v2330_v13, %s2149_s14  ;;  %p2054_p1 = scmp.ne.s32.totalorder %s2513_s13, %s2053_s12 }
 0x57b   : > { %p2055_p4 = pnand %p2054_p1, %p2282_p3 }
 0x57c   : > { %1117 = vrot.lane.b32.xlu0 %v2332_v15, %s2149_s14  ;;  %s2154_s14 = smov [#allocation10]  }
 0x57d   : > { %p2056_p6 = pneg %p2055_p4 }
 0x5e3   : > { %v985_v61 = vpop.xlane.xlu0 %984 }
 0x5e4   : > { %v991_v62 = vsub.f32 %v1751_v47, %v985_v61  ;;  %v785_v47 = vsel %vm299_vm0, %v2397_v34, 0.0 }
 0x5e6   : > { %v997_v8 = vmul.f32 1.442695, %v991_v62 }
 0x5e7   : > { %v979_v63 = vpop.xlane.xlu0 %978 }
 0x5e8   : > { %v989_v0 = vsub.f32 %v962_v49, %v979_v63  ;;  %v791_v49 = vsel %vm299_vm0, %v2403_v38, 0.0 }
 0x5e9   : > { %v982_v5 = vpop.xlane.xlu1 %981 }
 0x5ea   : > { %v993_v6 = vmul.f32 1.442695, %v989_v0  ;;  %v990_v7 = vsub.f32 %v965_v52, %v982_v5 }
 0x5eb   : > { %v988_v9 = vpop.xlane.xlu0 %987 }
 0x5ec   : > { %v995_v10 = vmul.f32 1.442695, %v990_v7  ;;  %v992_v11 = vsub.f32 %v1752_v50, %v988_v9  ;;  %1925 = vpow2.f32 %v993_v6 }
 0x5ed   : > { %v1134_v13 = vpop.permute.xlu1 %1133 }
 0x5ee   : > { %1927 = vpow2.f32 %v995_v10  ;;  %v999_v12 = vmul.f32 1.442695, %v992_v11  ;;  %v1145_v21 = vsel %vm483_vm1, %v1134_v13, 0 }
 0x5ef   : > { %1929 = vpow2.f32 %v997_v8  ;;  %v1016_v14 = vpop.permute.xlu0 %1015 }
 0x5f0   : > { %1931 = vpow2.f32 %v999_v12  ;;  %1755 = vmatprep.subr.bf16.mxu1 %v1016_v14 }
 0x5f1   : > { %1756 = vmatpush3.bf16.msra.mxu1 %v1016_v14  ;;  %v1132_v23 = vpop.permute.xlu1 %1131 }
 0x5f2   : > { %1791 = vmatprep.subr.msk.bf16.mxu1 %vm483_vm1, %v1134_v13  ;;  %v1142_v24 = vsel %vm483_vm1, %v1132_v23, 0 }
 0x5f3   : > { %v1118_v22 = vpop.permute.xlu0 %1117 }
 0x5f5   : > { %v1120_v25 = vpop.permute.xlu1 %1119 }
 0x5f9   : > { %v1926_v15 = vpop.eup %1925 }
 0x5fa   : > { %v1001_v50 = vsel %vm299_vm0, %v1926_v15, 0.0 }
 0x5fb   : > { %v1928_v16 = vpop.eup %1927 }
 0x5fc   : > { %v1930_v17 = vpop.eup %1929  ;;  %v1013_v18 = vpack.c.bf16 %v1928_v16, %v1926_v15  ;;  %v1004_v51 = vsel %vm299_vm0, %v1928_v16, 0.0 }
 0x5fd   : > { %v1932_v19 = vpop.eup %1931  ;;  %v1007_v33 = vsel %vm299_vm0, %v1930_v17, 0.0 }
 0x5fe   : > { %1757 = vmatprep.mubr.msk.bf16.mxu1 %vm299_vm0, %v1013_v18  ;;  %v1014_v20 = vpack.c.bf16 %v1932_v19, %v1930_v17  ;;  %v1010_v34 = vsel %vm299_vm0, %v1932_v19, 0.0  ;;  %v569_v18 = vsel %vm299_vm0, %v2355_v55, 0.0  ;;  %v572_v19 = vsel %vm299_vm0, %v2359_v58, 0.0 }
 0x600   : > { %1758 = vmatmul.mubr.msk.bf16.vlgmr.msra.gmra.mxu1 %vm299_vm0, %v1014_v20  ;;  %v575_v20 = vsel %vm299_vm0, %v2361_v59, 0.0 }
 0x601   : > { %1762 = vmatpush3.bf16.xpose.msra.mxu1 %v1145_v21  ;;  %1765 = vmatprep.mubr.msk.bf16.mxu1 %vm483_vm1, %v1118_v22  ;;  %v578_v21 = vsel %vm299_vm0, %v2357_v57, 0.0 }
 0x602   : > { %1792 = vmatprep.subr.msk.bf16.mxu1 %vm483_vm1, %v1132_v23 }
 0x609   : > { %1764 = vmatpush3.bf16.xpose.msra.mxu1 %v1142_v24 }
 0x610   : > { %1766 = vmatmul.mubr.msk.bf16.vlgmr.msra.gmra.mxu1 %vm483_vm1, %v1120_v25 }
 0x6c0   : > { %v2441_v26 = vpop.f32.mrf.mxu1 }
 0x6c2   : > { %v2443_v27 = vpop.f32.mrf.mxu1 }
 0x6c4   : > { %v2445_v28 = vpop.f32.mrf.mxu1 }
 0x6c6   : > { %v2447_v29 = vpop.f32.mrf.mxu1 }
 0x6d0   : > { %v1767_v30 = vpop.f32.mrf.mxu1 }
 0x6d1   : > { %v1202_v31 = vsel %vm299_vm0, %v1767_v30, -inf }
 0x6d2   : > { %1203 = vmax.xlane.f32.xlu0 %v1202_v31  ;;  %v1181_v32 = vpop.f32.mrf.mxu1 }
 0x6d3   : > { %v1196_v37 = vsel %vm299_vm0, %v1181_v32, -inf }
 0x6d4   : > { %v1768_v35 = vpop.f32.mrf.mxu1 }
 0x6d5   : > { %v1205_v41 = vsel %vm299_vm0, %v1768_v35, -inf }
 0x6d6   : > { %1197 = vmax.xlane.f32.xlu0 %v1196_v37  ;;  %v1184_v39 = vpop.f32.mrf.mxu1 }
 0x6d7   : > { %v1199_v40 = vsel %vm299_vm0, %v1184_v39, -inf }
 0x6d8   : > { %1200 = vmax.xlane.f32.xlu1 %v1199_v40 }
 0x6da   : > { %1206 = vmax.xlane.f32.xlu0 %v1205_v41 }
 0x6e9   : > { %1236 = vrot.lane.b32.xlu1 %v2426_v56, %s2150_s24 }
 0x6f0   : > { %1234 = vrot.lane.b32.xlu0 %v1904_v60, %s2150_s24  ;;  %s2057_s24 = sshll.u32 %s2154_s14, 4  ;;  %s2058_s24 = int_to_ptr.vmem [resolvable:$false] %s2057_s24 }
 0x6f1   : > { %p2060_p8 = scmp.lt.s32.totalorder %s2513_s13, %s2058_s24 }
 0x70d   : > { %783 = vadd.xlane.f32.xlu1 %v782_v42 }
 0x70f   : > { %786 = vadd.xlane.f32.xlu0 %v785_v47 }
 0x711   : > { %789 = vadd.xlane.f32.xlu1 %v788_v48 }
 0x713   : > { %792 = vadd.xlane.f32.xlu0 %v791_v49 }
 0x715   : > { %1002 = vadd.xlane.f32.xlu1 %v1001_v50 }
 0x717   : > { %1005 = vadd.xlane.f32.xlu0 %v1004_v51 }
 0x719   : > { %1008 = vadd.xlane.f32.xlu1 %v1007_v33 }
 0x71b   : > { %1011 = vadd.xlane.f32.xlu0 %v1010_v34 }
 0x75b   : > { %v1204_v52 = vpop.xlane.xlu0 %1203 }
 0x75c   : > { %v1210_v53 = vsub.f32 %v1767_v30, %v1204_v52 }
 0x75e   : > { %v1216_v56 = vmul.f32 1.442695, %v1210_v53 }
 0x75f   : > { %v1198_v36 = vpop.xlane.xlu0 %1197 }
 0x760   : > { %v1208_v54 = vsub.f32 %v1181_v32, %v1198_v36 }
 0x761   : > { %v1201_v60 = vpop.xlane.xlu1 %1200 }
 0x762   : > { %v1212_v38 = vmul.f32 1.442695, %v1208_v54  ;;  %v1209_v61 = vsub.f32 %v1184_v39, %v1201_v60 }
 0x763   : > { %v1207_v62 = vpop.xlane.xlu0 %1206 }
 0x764   : > { %1933 = vpow2.f32 %v1212_v38  ;;  %v1214_v63 = vmul.f32 1.442695, %v1209_v61  ;;  %v1211_v0 = vsub.f32 %v1768_v35, %v1207_v62 }
 0x765   : > { %1935 = vpow2.f32 %v1216_v56  ;;  %v1237_v5 = vpop.permute.xlu1 %1236 }
 0x766   : > { %1937 = vpow2.f32 %v1214_v63  ;;  %v1218_v6 = vmul.f32 1.442695, %v1211_v0  ;;  %1769 = vmatprep.subr.bf16.mxu0 %v1237_v5 }
 0x767   : > { %v1235_v7 = vpop.permute.xlu0 %1234  ;;  %1770 = vmatpush3.bf16.msra.mxu0 %v1237_v5 }
 0x768   : > { %1939 = vpow2.f32 %v1218_v6  ;;  %1771 = vmatprep.subr.bf16.mxu0 %v1235_v7 }
 0x76b   : > { %1772 = vmatpush3.bf16.msra.mxu0 %v1235_v7 }
 0x771   : > { %v1934_v8 = vpop.eup %1933 }
 0x772   : > { %v1936_v9 = vpop.eup %1935  ;;  %v1220_v10 = vsel %vm299_vm0, %v1934_v8, 0.0 }
 0x773   : > { %v1938_v11 = vpop.eup %1937  ;;  %1221 = vadd.xlane.f32.xlu1 %v1220_v10  ;;  %v1226_v15 = vsel %vm299_vm0, %v1936_v9, 0.0 }
 0x774   : > { %v1223_v12 = vsel %vm299_vm0, %v1938_v11, 0.0  ;;  %v1232_v14 = vpack.c.bf16 %v1938_v11, %v1934_v8 }
 0x775   : > { %v1940_v13 = vpop.eup %1939  ;;  %1224 = vadd.xlane.f32.xlu0 %v1223_v12 }
 0x776   : > { %1773 = vmatprep.mubr.msk.bf16.mxu0 %vm299_vm0, %v1232_v14  ;;  %v1233_v16 = vpack.c.bf16 %v1940_v13, %v1936_v9  ;;  %v1229_v17 = vsel %vm299_vm0, %v1940_v13, 0.0 }
 0x777   : > { %1227 = vadd.xlane.f32.xlu1 %v1226_v15 }
 0x778   : > { %1774 = vmatmul.mubr.msk.bf16.vlgmr.msra.gmra.mxu0 %vm299_vm0, %v1233_v16 }
 0x779   : > { %1230 = vadd.xlane.f32.xlu0 %v1229_v17 }
 0x77b   : > { %570 = vadd.xlane.f32.xlu1 %v569_v18 }
 0x77d   : > { %573 = vadd.xlane.f32.xlu0 %v572_v19 }
 0x77f   : > { %576 = vadd.xlane.f32.xlu1 %v575_v20 }
 0x781   : > { %579 = vadd.xlane.f32.xlu0 %v578_v21  ;;  %v1905_v21 = vld [vmem:[#allocation9 + $0x8] sm:$0xff]  }
 0x782   : > { %1777 = vmatprep.subr.bf16.mxu0 %v1905_v21 }
 0x783   : > { %1778 = vmatpush3.bf16.msra.mxu0 %v1905_v21 }
 0x796   : > { %v784_v22 = vpop.xlane.xlu1 %783 }
 0x797   : > { %1941 = vrcp.f32 %v784_v22  ;;  %v1906_v22 = vld [vmem:[#allocation9] sm:$0xff]  }
 0x798   : > { %v787_v23 = vpop.xlane.xlu0 %786  ;;  %1779 = vmatprep.subr.bf16.mxu0 %v1906_v22 }
 0x799   : > { %1943 = vrcp.f32 %v787_v23  ;;  %1780 = vmatpush3.bf16.msra.mxu0 %v1906_v22 }
 0x79a   : > { %v790_v24 = vpop.xlane.xlu1 %789 }
 0x79b   : > { %1945 = vrcp.f32 %v790_v24 }
 0x79c   : > { %v793_v55 = vpop.xlane.xlu0 %792 }
 0x79d   : > { %1947 = vrcp.f32 %v793_v55 }
 0x79e   : > { %v1003_v25 = vpop.xlane.xlu1 %1002 }
 0x79f   : > { %1949 = vrcp.f32 %v1003_v25 }
 0x7a0   : > { %v1006_v58 = vpop.xlane.xlu0 %1005 }
 0x7a1   : > { %1951 = vrcp.f32 %v1006_v58 }
 0x7a2   : > { %v1009_v30 = vpop.xlane.xlu1 %1008 }
 0x7a3   : > { %1953 = vrcp.f32 %v1009_v30 }
 0x7a4   : > { %v1942_v59 = vpop.eup %1941  ;;  %v1012_v31 = vpop.xlane.xlu0 %1011 }
 0x7a5   : > { %1955 = vrcp.f32 %v1012_v31  ;;  %v861_v57 = vmul.f32 %v1942_v59, %v2416_v44 }
 0x7a6   : > { %v1944_v32 = vpop.eup %1943 }
 0x7a7   : > { %v1640_v35 = vpack.c.bf16 %v861_v57, %v861_v57  ;;  %v862_v37 = vmul.f32 %v1944_v32, %v2420_v46 }
 0x7a8   : > { %v1946_v39 = vpop.eup %1945 }
 0x7a9   : > { %877 = vrot.lane.b32.xlu1 %v1640_v35, %s2151_s29  ;;  %v1641_v40 = vpack.c.bf16 %v862_v37, %v862_v37  ;;  %v863_v41 = vmul.f32 %v1946_v39, %v2414_v43 }
 0x7aa   : > { %v1948_v42 = vpop.eup %1947 }
 0x7ab   : > { %879 = vrot.lane.b32.xlu0 %v1641_v40, %s2151_s29  ;;  %v1642_v47 = vpack.c.bf16 %v863_v41, %v863_v41  ;;  %v864_v48 = vmul.f32 %v1948_v42, %v2418_v45 }
 0x7ac   : > { %v1950_v49 = vpop.eup %1949 }
 0x7ad   : > { %881 = vrot.lane.b32.xlu1 %v1642_v47, %s2151_s29  ;;  %v1080_v44 = vmul.f32 %v1950_v49, %v2443_v27  ;;  %v1643_v46 = vpack.c.bf16 %v864_v48, %v864_v48 }
 0x7ae   : > { %v1952_v50 = vpop.eup %1951 }
 0x7af   : > { %v1644_v51 = vpack.c.bf16 %v1080_v44, %v1080_v44  ;;  %v1081_v33 = vmul.f32 %v1952_v50, %v2447_v29  ;;  %v1619_v44 = vld [vmem:[%s2572_s3] ss:$0 sm:$0xff] }
 0x7b0   : > { %v1954_v34 = vpop.eup %1953 }
 0x7b1   : > { %883 = vrot.lane.b32.xlu1 %v1643_v46, %s2151_s29  ;;  %1096 = vrot.lane.b32.xlu0 %v1644_v51, %s2152_s22  ;;  %v1082_v43 = vmul.f32 %v1954_v34, %v2441_v26  ;;  %v1645_v53 = vpack.c.bf16 %v1081_v33, %v1081_v33 }
 0x7b2   : > { %v1956_v52 = vpop.eup %1955 }
 0x7b3   : > { %v1646_v45 = vpack.c.bf16 %v1082_v43, %v1082_v43  ;;  %v1083_v36 = vmul.f32 %v1956_v52, %v2445_v28 }
 0x7b5   : > { %1098 = vrot.lane.b32.xlu1 %v1645_v53, %s2152_s22  ;;  %1100 = vrot.lane.b32.xlu0 %v1646_v45, %s2152_s22  ;;  %v1647_v27 = vpack.c.bf16 %v1083_v36, %v1083_v36 }
 0x7b9   : > { %1102 = vrot.lane.b32.xlu1 %v1647_v27, %s2152_s22  ;;  %s2059_s22 = scalar_lea.vmem %s2058_s24, 1024 }
 0x7ba   : > { %p2061_p10 = scmp.lt.s32.totalorder %s2059_s22, %s2053_s12 }
 0x7bc   : > { %p2062_p11 = por %p2061_p10, %p2060_p8 }
 0x7be   : > { %p2063_p2 = pnand %p2062_p11, %p2056_p6 }
 0x7fc   : > { %v1222_v54 = vpop.xlane.xlu1 %1221 }
 0x7fe   : > { %v1225_v56 = vpop.xlane.xlu0 %1224 }
 0x800   : > { %v1228_v60 = vpop.xlane.xlu1 %1227 }
 0x802   : > { %v1231_v29 = vpop.xlane.xlu0 %1230 }
 0x804   : > { %v571_v38 = vpop.xlane.xlu1 %570 }
 0x805   : > { %1957 = vrcp.f32 %v571_v38 }
 0x806   : > { %v574_v61 = vpop.xlane.xlu0 %573 }
 0x807   : > { %1959 = vrcp.f32 %v574_v61 }
 0x808   : > { %v577_v62 = vpop.xlane.xlu1 %576 }
 0x809   : > { %1961 = vrcp.f32 %v577_v62 }
 0x80a   : > { %v580_v26 = vpop.xlane.xlu0 %579 }
 0x80b   : > { %1963 = vrcp.f32 %v580_v26 }
 0x80c   : > { %1965 = vrcp.f32 %v1222_v54 }
 0x80d   : > { %1967 = vrcp.f32 %v1228_v60 }
 0x80e   : > { %1969 = vrcp.f32 %v1225_v56 }
 0x80f   : > { %1971 = vrcp.f32 %v1231_v29 }
 0x812   : > { %v1958_v63 = vpop.eup %1957 }
 0x813   : > { %v648_v0 = vmul.f32 %v1958_v63, %v2376_v2 }
 0x814   : > { %v1960_v28 = vpop.eup %1959 }
 0x815   : > { %v1636_v5 = vpack.c.bf16 %v648_v0, %v648_v0  ;;  %v649_v6 = vmul.f32 %v1960_v28, %v2380_v4 }
 0x816   : > { %v1962_v7 = vpop.eup %1961 }
 0x817   : > { %669 = vst.msk [vmem:[#allocation3] sm:$0xf] %vm668_vm3, %v1636_v5  ;;  %v1637_v8 = vpack.c.bf16 %v649_v6, %v649_v6  ;;  %v650_v9 = vmul.f32 %v1962_v7, %v2374_v1 }
 0x818   : > { %v1964_v10 = vpop.eup %1963 }
 0x819   : > { %670 = vst.msk [vmem:[#allocation3 + $0x4] sm:$0xf] %vm668_vm3, %v1637_v8  ;;  %v1638_v11 = vpack.c.bf16 %v650_v9, %v650_v9  ;;  %v651_v12 = vmul.f32 %v1964_v10, %v2378_v3  ;;  %v1966_v19 = vpop.eup %1965 }
 0x81a   : > { %v1968_v24 = vpop.eup %1967 }
 0x81b   : > { %v878_v14 = vpop.permute.xlu1 %877  ;;  %671 = vst.msk [vmem:[#allocation3 + $0x8] sm:$0xf] %vm668_vm3, %v1638_v11  ;;  %v1639_v2 = vpack.c.bf16 %v651_v12, %v651_v12  ;;  %v1970_v30 = vpop.eup %1969 }
 0x81c   : > { %890 = vst.msk [vmem:[#allocation3] sm:$0xf] %vm889_vm4, %v878_v14  ;;  %v1972_v57 = vpop.eup %1971 }
 0x81d   : > { %v880_v4 = vpop.permute.xlu0 %879  ;;  %672 = vst.msk [vmem:[#allocation3 + $0xc] sm:$0xf] %vm668_vm3, %v1639_v2 }
 0x81e   : > { %891 = vst.msk [vmem:[#allocation3 + $0x4] sm:$0xf] %vm889_vm4, %v880_v4 }
 0x81f   : > { %v882_v13 = vpop.permute.xlu1 %881 }
 0x820   : > { %892 = vst.msk [vmem:[#allocation3 + $0x8] sm:$0xf] %vm889_vm4, %v882_v13 }
 0x823   : > { %v1097_v1 = vpop.permute.xlu0 %1096  ;;  %v884_v15 = vpop.permute.xlu1 %883 }
 0x824   : > { %1109 = vst.msk [vmem:[#allocation3] sm:$0xf] %vm1108_vm5, %v1097_v1 }
 0x825   : > { %893 = vst.msk [vmem:[#allocation3 + $0xc] sm:$0xf] %vm889_vm4, %v884_v15 }
 0x827   : > { %v1101_v3 = vpop.permute.xlu0 %1100  ;;  %v1099_v16 = vpop.permute.xlu1 %1098 }
 0x828   : > { %1111 = vst.msk [vmem:[#allocation3 + $0x8] sm:$0xf] %vm1108_vm5, %v1101_v3  ;;  %1110 = vst.msk [vmem:[#allocation3 + $0x4] sm:$0xf] %vm1108_vm5, %v1099_v16 }
 0x82b   : > { %v1103_v17 = vpop.permute.xlu1 %1102 }
 0x82c   : > { %1112 = vst.msk [vmem:[#allocation3 + $0xc] sm:$0xf] %vm1108_vm5, %v1103_v17 }
 0x838   : > { %v1775_v18 = vpop.f32.mrf.mxu0 }
 0x839   : > { %v1301_v25 = vmul.f32 %v1968_v24, %v1775_v18 }
 0x83a   : > { %v1280_v20 = vpop.f32.mrf.mxu0 }
 0x83b   : > { %v1299_v23 = vmul.f32 %v1966_v19, %v1280_v20  ;;  %v1650_v32 = vpack.c.bf16 %v1301_v25, %v1301_v25 }
 0x83c   : > { %v1776_v55 = vpop.f32.mrf.mxu0 }
 0x83d   : > { %v1648_v58 = vpack.c.bf16 %v1299_v23, %v1299_v23  ;;  %v1302_v35 = vmul.f32 %v1972_v57, %v1776_v55 }
 0x83e   : > { %v1283_v59 = vpop.f32.mrf.mxu0 }
 0x83f   : > { %v1300_v31 = vmul.f32 %v1970_v30, %v1283_v59  ;;  %1315 = vrot.lane.b32.xlu0 %v1648_v58, %s2153_s6  ;;  %v1651_v39 = vpack.c.bf16 %v1302_v35, %v1302_v35 }
 0x841   : > { %v1649_v37 = vpack.c.bf16 %v1300_v31, %v1300_v31 }
 0x843   : > { %1317 = vrot.lane.b32.xlu1 %v1649_v37, %s2153_s6  ;;  %1319 = vrot.lane.b32.xlu0 %v1650_v32, %s2153_s6 }
 0x847   : > { %1321 = vrot.lane.b32.xlu1 %v1651_v39, %s2153_s6 }
 0x8b1   : > { %v1316_v40 = vpop.permute.xlu0 %1315 }
 0x8b2   : > { %1328 = vst.msk [vmem:[#allocation3] sm:$0xf] %vm1327_vm6, %v1316_v40 }
 0x8b5   : > { %v1320_v41 = vpop.permute.xlu0 %1319  ;;  %v1318_v42 = vpop.permute.xlu1 %1317 }
 0x8b6   : > { %1330 = vst.msk [vmem:[#allocation3 + $0x8] sm:$0xf] %vm1327_vm6, %v1320_v41  ;;  %1329 = vst.msk [vmem:[#allocation3 + $0x4] sm:$0xf] %vm1327_vm6, %v1318_v42 }
 0x8b9   : > { %v1322_v47 = vpop.permute.xlu1 %1321 }
 0x8ba   : > { %1331 = vst.msk [vmem:[#allocation3 + $0xc] sm:$0xf] %vm1327_vm6, %v1322_v47 }
 0x8bd   : > { %v1907_v48 = vld [vmem:[#allocation3] sm:$0xff]  }
 0x8be   : > { %1781 = vmatprep.mubr.msk.bf16.mxu0 %vm299_vm0, %v1907_v48 }
 0x8c1   : > { %v1908_v49 = vld [vmem:[#allocation3 + $0x8] sm:$0xff]  }
 0x8c2   : > { %1782 = vmatmul.mubr.msk.bf16.vlgmr.msra.gmra.mxu0 %vm299_vm0, %v1908_v49 }
 0x982   : > { %v1783_v50 = vpop.f32.mrf.mxu0 }
 0x983   : > { %v1418_v46 = vadd.f32 %v1783_v50, %v1619_v44 }
 0x984   : > { %v1409_v51 = vpop.f32.mrf.mxu0 }
 0x985   : > { %1426 = vst.msk [vmem:[%s258_s11 + $0x10] sm:$0xff] %vm299_vm0, %v1418_v46  ;;  %v1410_v33 = vadd.f32 %v1619_v44, %v1409_v51 }
 0x986   : > { %v1784_v34 = vpop.f32.mrf.mxu0 }
 0x987   : > { %1424 = vst.msk [vmem:[%s258_s11] sm:$0xff] %vm299_vm0, %v1410_v33  ;;  %v1421_v43 = vadd.f32 %v1784_v34, %v1619_v44 }
 0x988   : > { %v1412_v52 = vpop.f32.mrf.mxu0 }
 0x989   : > { %1427 = vst.msk [vmem:[%s258_s11 + $0x18] sm:$0xff] %vm299_vm0, %v1421_v43  ;;  %v1413_v53 = vadd.f32 %v1619_v44, %v1412_v52 }
 0x98b   : > { %1425 = vst.msk [vmem:[%s258_s11 + $0x8] sm:$0xff] %vm299_vm0, %v1413_v53 }
 0x98c   : > { %2066 = shalt.err (!%p2063_p2)
}
 0x98d   : > { %s2067_s6 = scalar_lea.hbm %s2519_s8, 512  ;;  %s2071_s9 = scalar_lea.hbm %s2573_s4, 1024 }
 0x98e   : > { %p2068_p9 = scmp.ne.s32.totalorder %s2519_s8, %s2067_s6  ;;  %p2072_p0 = scmp.lt.s32.totalorder %s2519_s8, %s2573_s4 }
 0x98f   : > { %p2073_p7 = scmp.lt.s32.totalorder %s2071_s9, %s2067_s6 }
 0x990   : > { %p2069_p12 = pnand %p2068_p9, %p2282_p3 }
 0x991   : > { %p2074_p5 = por %p2073_p7, %p2072_p0 }
 0x992   : > { %p2070_p13 = pneg %p2069_p12 }
 0x994   : > { %p2075_p1 = pnand %p2074_p5, %p2070_p13 }
 0x996   : > { %2078 = shalt.err (!%p2075_p1)
}
 0x997   : > { %s2155_s23 = smov 128  }
 0x998   : > { %1803 = dma.vmem_to_hbm [thread:$0]  (%p2282_p3), %s2513_s13, 512, %s2519_s8, %s1429_s18, %s2155_s23, %s2155_s23, %s2151_s29  }
 0x999 PF: > { %s1459_s25 = sand.u32 1, %s2117_s15   ;;  %p2586_p4 = scmp.ne.s32.totalorder %s2579_s26, 0 }
 0x99a   : > { %p2587_p6 = scmp.ge.s32.totalorder %s2137_s20, 2  ;;  %s1460_s12 = scalar_lea.sflag [#allocation6], %s1459_s25 }
 0x99c   : > { %p1817_p8 = pnand %p2587_p6, %p2586_p4 }
 0x99e   : > { %p1818_p10 = pneg %p1817_p8 }
 0x9a0   : > { %2112 = dma.done.wait (%p1818_p10), %s1460_s12, 512  }
 0x9a1   : > { %2114 = vsyncadd (%p1818_p10), %s1460_s12, 4294966784  ;;  %s21_s20 = sadd.s32 1, %s2137_s20   ;;  %s2588_s15 = smov %s2121_s16 }
 0x9a2   : > { %p18_p11 = scmp.ge.s32.totalorder %s21_s20, 4   ;;  %s2589_s16 = smov %s2125_s17 }
 0x9a3   : > { %s2590_s17 = smov %s2291_s7  ;;  %s2591_s18 = smov %s2133_s19 }
 0x9a4   : > { %s2592_s19 = smov %s2594_s21  ;;  %20 = sbr.rel (!%p18_p11) target bundleno = 7 (0x7), region = 94 }
 0x9a9   :  { %1465 = vsyncpa [#allocation5], 1 }
 0x9aa   :  { %1467 = vsyncpa [#allocation5 + $0x1], 1 }
 0x9ab   :  { %1468 = vsyncpa [#allocation8], 1 }
 0x9ac   :  { %1469 = vsyncpa [#allocation6], 1 }
 0x9ad   :  { %1471 = vsyncpa [#allocation6 + $0x1], 1 }

// kernel: tpu_custom_call.1
= control target key start
LH: loop header
LB: loop body
LE: loop exit
PB: predicated region body
PF: predicated region fallthrough
CT: control target
= control target key end

     0   :  { %9 = vsyncpa [#allocation5], 0  ;;  %s2569_s0 = inlined_call_operand.hbm [shape: bf16[2,32,32], index: 0, kind: input, shape index: {}]   ;;  %s2570_s1 = inlined_call_operand.hbm [shape: bf16[32,96], index: 1, kind: input, shape index: {}]   ;;  %s2571_s2 = inlined_call_operand.hbm [shape: bf16[32,32], index: 2, kind: input, shape index: {}]   ;;  %s2572_s3 = inlined_call_operand.vmem [shape: f32[1,32], index: 3, kind: input, shape index: {}]   ;;  %s2573_s4 = inlined_call_operand.hbm [shape: f32[2,32,32], index: 4, kind: output, shape index: {}]  }
   0x1   :  { %11 = vsyncpa [#allocation5 + $0x1], 0 }
   0x2   :  { %12 = vsyncpa [#allocation8], 0 }
   0x3   :  { %13 = vsyncpa [#allocation6], 0 }
   0x4   :  { %15 = vsyncpa [#allocation6 + $0x1], 0  ;;  %s2181_s15 = smov 0   ;;  %s2183_s16 = smov 0  }
   0x5   :  { %s2185_s17 = smov 0   ;;  %s2187_s18 = smov 0  }
   0x6   :  { %s2189_s19 = smov 0   ;;  %s2191_s20 = smov 0  }
   0x7 LB: > { %s1549_s21 = sadd.s32 4294967295, %s2137_s20   ;;  %s1550_s22 = sadd.s32 4294967294, %s2137_s20   ;;  %s2137_s20 = sphi %s2191_s20, %s21_s20   ;;  %s2133_s19 = sphi %s2189_s19, %s2592_s19   ;;  %s2129_s18 = sphi %s2187_s18, %s2591_s18   ;;  %s2125_s17 = sphi %s2185_s17, %s2590_s17   ;;  %s2121_s16 = sphi %s2183_s16, %s2589_s16   ;;  %s2117_s15 = sphi %s2181_s15, %s2588_s15  }
   0x8   : > { %p53_p0 = scmp.ne.s32.totalorder %s2121_s16, %s2117_s15  ;;  %p2215_p1 = scmp.eq.s32.totalorder %s1549_s21, 0 }
   0x9   : > { %p2219_p2 = scmp.eq.s32.totalorder %s1549_s21, 1  ;;  %p148_p3 = scmp.eq.s32.totalorder %s1550_s22, 1 }
   0xa   : > { %p2225_p4 = por %p2215_p1, %p53_p0  ;;  %p1551_p5 = scmp.ge.s32.totalorder %s2137_s20, 1 }
   0xb   : > { %p2230_p6 = por %p148_p3, %p53_p0  ;;  %p155_p7 = scmp.lt.s32.totalorder %s2137_s20, 3 }
   0xc   : > { %s2139_s28 = smov [#allocation7]   ;;  %s2140_s5 = smov [#allocation9]  }
   0xd   : > { %s2579_s26 = scalar_select %p2230_p6, 1, 0 }
   0xe   : > { %p2235_p8 = pnand %p1551_p5, %p155_p7  ;;  %s167_s29 = sshll.u32 %s2139_s28, 4  ;;  %s168_s29 = int_to_ptr.vmem [resolvable:$true] %s167_s29 }
   0xf   : > { %s180_s6 = sshll.u32 %s2140_s5, 4  ;;  %s1984_s7 = scalar_lea.vmem %s168_s29, 256  ;;  %s181_s6 = int_to_ptr.vmem [resolvable:$true] %s180_s6 }
  0x10   : > { %p1805_p9 = pneg %p2235_p8  ;;  %p1985_p13 = scmp.ne.s32.totalorder %s168_s29, %s1984_s7 }
  0x11   : > { %p1992_p5 = scmp.lt.s32.totalorder %s168_s29, %s168_s29  ;;  %p1993_p7 = scmp.lt.s32.totalorder %s1984_s7, %s1984_s7 }
  0x12   : > { %p2244_p11 = pnand %p1805_p9, %p2215_p1 }
  0x13   : > { %p1994_p10 = por %p1993_p7, %p1992_p5 }
  0x14   : > { %p1975_p12 = pneg %p2244_p11 }
  0x16   : > { %p1987_p0 = pnand %p1985_p13, %p1975_p12 }
  0x18   : > { %p1988_p3 = pneg %p1987_p0 }
  0x1a   : > { %p1995_p9 = pnand %p1994_p10, %p1988_p3 }
  0x1c   : > { %1998 = shalt.err (!%p1995_p9)
}
  0x1d   : > { %s2574_s8 = smov 64   ;;  %s2575_s9 = smov 4  }
  0x1e   : > { %1808 = dma.hbm_to_vmem [thread:$0]  (!%p2244_p11), %s2570_s1, 256, %s168_s29, [#allocation8], %s2574_s8, %s2574_s8, %s2575_s9  }
  0x1f   : > { %s2010_s12 = scalar_lea.vmem %s181_s6, 256  ;;  %p2018_p10 = scmp.lt.s32.totalorder %s181_s6, %s181_s6 }
  0x20   : > { %p2011_p13 = scmp.ne.s32.totalorder %s181_s6, %s2010_s12  ;;  %p2019_p3 = scmp.lt.s32.totalorder %s2010_s12, %s2010_s12 }
  0x22   : > { %p2013_p0 = pnand %p2011_p13, %p1975_p12  ;;  %p2020_p7 = por %p2019_p3, %p2018_p10 }
  0x24   : > { %p2014_p5 = pneg %p2013_p0 }
  0x26   : > { %p2021_p9 = pnand %p2020_p7, %p2014_p5 }
  0x28   : > { %2024 = shalt.err (!%p2021_p9)
}
  0x29   : > { %1811 = dma.hbm_to_vmem [thread:$0]  (!%p2244_p11), %s2571_s2, 256, %s181_s6, [#allocation8], %s2574_s8, %s2574_s8, %s2575_s9  }
  0x2a   : > { %s33_s21 = sadd.s32 1, %s2133_s19  ;;  %s40_s22 = sadd.s32 1, %s2125_s17 }
  0x2b   : > { %p35_p12 = scmp.ge.s32.totalorder %s33_s21, 2  ;;  %p47_p13 = scmp.ne.s32.totalorder %s2125_s17, %s2121_s16 }
  0x2c   : > { %p48_p0 = scmp.eq.s32.totalorder %s2137_s20, 0  ;;  %p1822_p5 = scmp.lt.s32.totalorder %s2137_s20, 2 }
  0x2d   : > { %s2594_s21 = smov (%p35_p12, %s33_s21), 0  ;;  %p2282_p3 = por %p2219_p2, %p47_p13 }
  0x2e   : > { %p49_p10 = por %p48_p0, %p47_p13  ;;  %s37_s29 = ssub.s32 %s2133_s19, %s2594_s21 }
  0x2f   : > { %s197_s30 = sand.u32 1, %s2125_s17   ;;  %p38_p7 = scmp.eq.s32.totalorder %s37_s29, 0 }
  0x30   : > { %s1555_s5 = sshll.u32 %s197_s30, 4  ;;  %s1631_s6 = sshll.u32 %s2133_s19, 8 }
  0x31   : > { %s2291_s7 = scalar_select %p38_p7, %s2125_s17, %s40_s22  }
  0x32   : > { %s207_s12 = scalar_lea.hbm %s2569_s0, %s1631_s6  ;;  %s201_s13 = scalar_lea.vmem [#allocation4], %s1555_s5 }
  0x33   : > { %s208_s14 = sshll.u32 %s201_s13, 4  ;;  %p2298_p11 = pnand %p1822_p5, %p49_p10  ;;  %s209_s14 = int_to_ptr.vmem [resolvable:$true] %s208_s14 }
  0x34   : > { %s198_s8 = scalar_lea.sflag [#allocation5], %s197_s30  ;;  %s2038_s29 = scalar_lea.vmem %s209_s14, 256 }
  0x35   : > { %p2027_p2 = pneg %p2298_p11  ;;  %p2039_p9 = scmp.ne.s32.totalorder %s209_s14, %s2038_s29 }
  0x36   : > { %s2143_s22 = smov [#allocation4]  }
  0x37   : > { %p2041_p12 = pnand %p2039_p9, %p2027_p2  ;;  %s2043_s9 = sshll.u32 %s2143_s22, 4  ;;  %s2044_s9 = int_to_ptr.vmem [resolvable:$false] %s2043_s9 }
  0x38   : > { %s2045_s6 = scalar_lea.vmem %s2044_s9, 512  ;;  %p2046_p0 = scmp.lt.s32.totalorder %s209_s14, %s2044_s9 }
  0x39   : > { %p2042_p13 = pneg %p2041_p12  ;;  %p2047_p7 = scmp.lt.s32.totalorder %s2045_s6, %s2038_s29 }
  0x3b   : > { %p2048_p6 = por %p2047_p7, %p2046_p0 }
  0x3d   : > { %p2049_p5 = pnand %p2048_p6, %p2042_p13 }
  0x3f   : > { %2052 = shalt.err (!%p2049_p5)
}
  0x40   : > { %s2584_s5 = smov 4   ;;  %s2585_s10 = smov 64  }
  0x41   : > { %1815 = dma.hbm_to_vmem [thread:$0]  (!%p2298_p11), %s207_s12, 256, %s209_s14, %s198_s8, %s2585_s10, %s2585_s10, %s2584_s5  }
  0x42   : > { %220 = sbr.rel (%p2235_p8) target bundleno = 2457 (0x999), region = 36  ;;  %s2312_s30 = sand.u32 (!%p2235_p8), 1, %s2121_s16  }
  0x43   : > { %s1559_s9 = sshll.u32 (!%p2235_p8), %s2312_s30, 4  ;;  %s223_s11 = scalar_lea.sflag (!%p2235_p8), [#allocation5], %s2312_s30 }
  0x44   : > { %s226_s13 = scalar_lea.vmem (!%p2235_p8), [#allocation4], %s1559_s9 }
  0x47   : > { %2104 = dma.done.wait (%p2225_p4), %s223_s11, 256  }
  0x48   : > { %2106 = vsyncadd (%p2225_p4), %s223_s11, 4294967040 }
  0x49   : > { %2108 = dma.done.wait (%p2215_p1), [#allocation8], 512  }
  0x4a   : > { %2110 = vsyncadd (%p2215_p1), [#allocation8], 4294966784  ;;  %v1889_v0 = vld [vmem:[#allocation7 + $0x8] sm:$0xff]   ;;  %v1890_v1 = vld [vmem:[#allocation7] sm:$0xff]   ;;  %vm299_vm0 = vcmask 261120   ;;  %s2144_s27 = smov 96  }
  0x4b   : > { %295 = vrot.lane.b32.xlu0 %v1889_v0, %s2144_s27  ;;  %v1891_v2 = vld [vmem:[%s226_s13] sm:$0xff]   ;;  %v1893_v3 = vld [vmem:[#allocation7 + $0x8] sm:$0xff]   ;;  %vm483_vm1 = vcmask 64512   ;;  %vm371_vm2 = vcmask 519168   ;;  %s2145_s23 = smov 120   ;;  %s2146_s25 = smov 88  }
  0x4c   : > { %1701 = vmatprep.mubr.msk.bf16.mxu0 %vm299_vm0, %v1891_v2  ;;  %v1894_v4 = vld [vmem:[#allocation7] sm:$0xff]   ;;  %1705 = vmatprep.subr.bf16.mxu1 %v1893_v3  ;;  %v1896_v6 = vld [vmem:[%s226_s13 + $0x8] sm:$0xff]   ;;  %s2147_s8 = smov 112   ;;  %s2148_s12 = smov 80   ;;  %vm668_vm3 = vcmask 60416   ;;  %vm889_vm4 = vcmask 126016  }
  0x4d   : > { %v1895_v5 = vld [vmem:[%s226_s13] sm:$0xff]   ;;  %1706 = vmatpush3.bf16.msra.mxu1 %v1893_v3  ;;  %v1892_v9 = vld [vmem:[%s226_s13 + $0x8] sm:$0xff]   ;;  %s2149_s14 = smov 104   ;;  %s2150_s24 = smov 72   ;;  %vm1108_vm5 = vcmask 191616   ;;  %vm1327_vm6 = vcmask 257216  }
  0x4e   : > { %1707 = vmatprep.subr.bf16.mxu1 %v1894_v4  ;;  %1709 = vmatprep.mubr.msk.bf16.mxu1 %vm299_vm0, %v1895_v5  ;;  %s2151_s29 = smov 8   ;;  %s2152_s22 = smov 16  }
  0x4f   : > { %293 = vrot.lane.b32.xlu0 %v1890_v1, %s2144_s27  ;;  %s2153_s6 = smov 24   ;;  %s1562_s5 = sshll.u32 %s2312_s30, 5 }
  0x50   : > { %s258_s11 = scalar_lea.vmem [#allocation10], %s1562_s5 }
  0x51   : > { %1708 = vmatpush3.bf16.msra.mxu1 %v1894_v4  ;;  %s1444_s13 = sshll.u32 %s258_s11, 4  ;;  %s2513_s13 = int_to_ptr.vmem [resolvable:$true] %s1444_s13 }
  0x54   : > { %1710 = vmatmul.mubr.msk.bf16.vlgmr.msra.gmra.mxu1 %vm299_vm0, %v1896_v6 }
  0xbd   : > { %v296_v7 = vpop.permute.xlu0 %295 }
  0xbe   : > { %1697 = vmatprep.subr.bf16.mxu0 %v296_v7 }
  0xbf   : > { %1698 = vmatpush3.bf16.msra.mxu0 %v296_v7 }
  0xc1   : > { %v294_v8 = vpop.permute.xlu0 %293 }
  0xc2   : > { %1699 = vmatprep.subr.bf16.mxu0 %v294_v8 }
  0xc3   : > { %1700 = vmatpush3.bf16.msra.mxu0 %v294_v8 }
  0xc6   : > { %1702 = vmatmul.mubr.msk.bf16.vlgmr.msra.gmra.mxu0 %vm299_vm0, %v1892_v9 }
 0x114   : > { %v1711_v10 = vpop.f32.mrf.mxu1 }
 0x116   : > { %v452_v11 = vpop.f32.mrf.mxu1 }
 0x118   : > { %v1712_v12 = vpop.f32.mrf.mxu1 }
 0x119   : > { %v2330_v13 = vpack.c.bf16 %v1712_v12, %v1711_v10 }
 0x11a   : > { %v455_v14 = vpop.f32.mrf.mxu1 }
 0x11b   : > { %v2332_v15 = vpack.c.bf16 %v455_v14, %v452_v11 }
 0x11d   : > { %1717 = vmatprep.mubr.msk.bf16.mxu0 %vm483_vm1, %v2332_v15 }
 0x186   : > { %v1703_v16 = vpop.f32.mrf.mxu0 }
 0x187   : > { %v1634_v17 = vpack.c.bf16 %v1703_v16, %v1703_v16 }
 0x188   : > { %v340_v18 = vpop.f32.mrf.mxu0 }
 0x189   : > { %374 = vst.msk [vmem:[#allocation2 + $0x8] sm:$0xf] %vm371_vm2, %v1634_v17  ;;  %v1632_v19 = vpack.c.bf16 %v340_v18, %v340_v18 }
 0x18a   : > { %v1704_v20 = vpop.f32.mrf.mxu0 }
 0x18b   : > { %372 = vst.msk [vmem:[#allocation2] sm:$0xf] %vm371_vm2, %v1632_v19  ;;  %v1635_v21 = vpack.c.bf16 %v1704_v20, %v1704_v20 }
 0x18c   : > { %v343_v22 = vpop.f32.mrf.mxu0 }
 0x18d   : > { %375 = vst.msk [vmem:[#allocation2 + $0xc] sm:$0xf] %vm371_vm2, %v1635_v21  ;;  %v1633_v23 = vpack.c.bf16 %v343_v22, %v343_v22 }
 0x18f   : > { %373 = vst.msk [vmem:[#allocation2 + $0x4] sm:$0xf] %vm371_vm2, %v1633_v23 }
 0x194   : > { %v1897_v24 = vld [vmem:[#allocation2 + $0x8] sm:$0xff]  }
 0x195   : > { %585 = vrot.lane.b32.xlu1 %v1897_v24, %s2144_s27  ;;  %1785 = vmatprep.subr.msk.bf16.mxu0 %vm483_vm1, %v1897_v24  ;;  %v494_v25 = vsel %vm483_vm1, %v1897_v24, 0  ;;  %v1899_v38 = vld [vmem:[#allocation2 + $0x8] sm:$0xff]  }
 0x196   : > { %v1898_v26 = vld [vmem:[#allocation2] sm:$0xff]   ;;  %1714 = vmatpush3.bf16.xpose.msra.mxu0 %v494_v25  ;;  %v1901_v14 = vld [vmem:[#allocation2 + $0x8] sm:$0xff]  }
 0x197   : > { %1786 = vmatprep.subr.msk.bf16.mxu0 %vm483_vm1, %v1898_v26  ;;  %v491_v27 = vsel %vm483_vm1, %v1898_v26, 0  ;;  %v2349_v39 = vld [vmem:[#allocation2] sm:$0xff]  }
 0x198   : > { %v2386_v16 = vld [vmem:[#allocation2] sm:$0xff]  }
 0x199   : > { %583 = vrot.lane.b32.xlu1 %v1898_v26, %s2144_s27  ;;  %s1652_s27 = sshll.u32 %s2129_s18, 9  ;;  %s1429_s18 = scalar_lea.sflag [#allocation6], %s2312_s30 }
 0x19e   : > { %1716 = vmatpush3.bf16.xpose.msra.mxu0 %v491_v27 }
 0x1a5   : > { %1718 = vmatmul.mubr.msk.bf16.vlgmr.msra.gmra.mxu0 %vm483_vm1, %v2330_v13 }
 0x207   : > { %v586_v28 = vpop.permute.xlu1 %585 }
 0x208   : > { %1721 = vmatprep.subr.bf16.mxu1 %v586_v28 }
 0x209   : > { %1722 = vmatpush3.bf16.msra.mxu1 %v586_v28 }
 0x20b   : > { %v584_v29 = vpop.permute.xlu1 %583 }
 0x20c   : > { %1723 = vmatprep.subr.bf16.mxu1 %v584_v29 }
 0x20d   : > { %1724 = vmatpush3.bf16.msra.mxu1 %v584_v29 }
 0x265   : > { %v1719_v30 = vpop.f32.mrf.mxu0 }
 0x266   : > { %v551_v31 = vsel %vm299_vm0, %v1719_v30, -inf }
 0x267   : > { %552 = vmax.xlane.f32.xlu0 %v551_v31  ;;  %v530_v32 = vpop.f32.mrf.mxu0 }
 0x268   : > { %v545_v33 = vsel %vm299_vm0, %v530_v32, -inf }
 0x269   : > { %546 = vmax.xlane.f32.xlu1 %v545_v33  ;;  %v1720_v34 = vpop.f32.mrf.mxu0 }
 0x26a   : > { %v554_v35 = vsel %vm299_vm0, %v1720_v34, -inf }
 0x26b   : > { %v533_v36 = vpop.f32.mrf.mxu0 }
 0x26c   : > { %v548_v37 = vsel %vm299_vm0, %v533_v36, -inf }
 0x26d   : > { %555 = vmax.xlane.f32.xlu1 %v554_v35 }
 0x271   : > { %549 = vmax.xlane.f32.xlu1 %v548_v37 }
 0x27d   : > { %679 = vrot.lane.b32.xlu0 %v2332_v15, %s2145_s23 }
 0x282   : > { %695 = vrot.lane.b32.xlu1 %v1899_v38, %s2145_s23 }
 0x286   : > { %693 = vrot.lane.b32.xlu1 %v2349_v39, %s2145_s23 }
 0x28a   : > { %681 = vrot.lane.b32.xlu1 %v2330_v13, %s2145_s23 }
 0x28e   : > { %798 = vrot.lane.b32.xlu1 %v1899_v38, %s2146_s25 }
 0x2f0   : > { %v553_v41 = vpop.xlane.xlu0 %552 }
 0x2f1   : > { %v559_v45 = vsub.f32 %v1719_v30, %v553_v41 }
 0x2f2   : > { %v547_v40 = vpop.xlane.xlu1 %546 }
 0x2f3   : > { %v557_v42 = vsub.f32 %v530_v32, %v547_v40  ;;  %v565_v50 = vmul.f32 1.442695, %v559_v45 }
 0x2f4   : > { %v680_v62 = vpop.permute.xlu0 %679 }
 0x2f5   : > { %v561_v46 = vmul.f32 1.442695, %v557_v42 }
 0x2f6   : > { %v556_v43 = vpop.xlane.xlu1 %555 }
 0x2f7   : > { %v560_v44 = vsub.f32 %v1720_v34, %v556_v43  ;;  %1909 = vpow2.f32 %v561_v46 }
 0x2f9   : > { %v567_v47 = vmul.f32 1.442695, %v560_v44 }
 0x2fa   : > { %v550_v48 = vpop.xlane.xlu1 %549 }
 0x2fb   : > { %v558_v49 = vsub.f32 %v533_v36, %v550_v48  ;;  %1911 = vpow2.f32 %v567_v47 }
 0x2fd   : > { %v563_v51 = vmul.f32 1.442695, %v558_v49 }
 0x2fe   : > { %v696_v52 = vpop.permute.xlu1 %695 }
 0x2ff   : > { %1913 = vpow2.f32 %v563_v51  ;;  %1787 = vmatprep.subr.msk.bf16.mxu1 %vm483_vm1, %v696_v52  ;;  %v707_v63 = vsel %vm483_vm1, %v696_v52, 0 }
 0x300   : > { %1915 = vpow2.f32 %v565_v50 }
 0x302   : > { %v694_v53 = vpop.permute.xlu1 %693 }
 0x303   : > { %v704_v0 = vsel %vm483_vm1, %v694_v53, 0 }
 0x304   : > { %v2355_v55 = vpop.eup %1909 }
 0x306   : > { %v682_v54 = vpop.permute.xlu1 %681 }
 0x308   : > { %v2357_v57 = vpop.eup %1911 }
 0x30a   : > { %v799_v56 = vpop.permute.xlu1 %798 }
 0x30b   : > { %1737 = vmatprep.subr.bf16.mxu0 %v799_v56 }
 0x30c   : > { %v2359_v58 = vpop.eup %1913  ;;  %1738 = vmatpush3.bf16.msra.mxu0 %v799_v56  ;;  %v2426_v56 = vld [vmem:[#allocation2 + $0x8] sm:$0xff]  }
 0x30d   : > { %v2361_v59 = vpop.eup %1915  ;;  %v581_v60 = vpack.c.bf16 %v2359_v58, %v2355_v55 }
 0x30e   : > { %v582_v61 = vpack.c.bf16 %v2357_v57, %v2361_v59 }
 0x30f   : > { %1725 = vmatprep.mubr.msk.bf16.mxu1 %vm299_vm0, %v581_v60  ;;  %v1904_v60 = vld [vmem:[#allocation2] sm:$0xff]  }
 0x310   : > { %1726 = vmatmul.mubr.msk.bf16.vlgmr.msra.gmra.mxu1 %vm299_vm0, %v582_v61 }
 0x311   : > { %1730 = vmatpush3.bf16.xpose.msra.mxu1 %v707_v63  ;;  %1733 = vmatprep.mubr.msk.bf16.mxu1 %vm483_vm1, %v680_v62 }
 0x312   : > { %1788 = vmatprep.subr.msk.bf16.mxu1 %vm483_vm1, %v694_v53 }
 0x319   : > { %1732 = vmatpush3.bf16.xpose.msra.mxu1 %v704_v0 }
 0x320   : > { %1734 = vmatmul.mubr.msk.bf16.vlgmr.msra.gmra.mxu1 %vm483_vm1, %v682_v54 }
 0x3d0   : > { %v2374_v1 = vpop.f32.mrf.mxu1 }
 0x3d2   : > { %v2376_v2 = vpop.f32.mrf.mxu1 }
 0x3d4   : > { %v2378_v3 = vpop.f32.mrf.mxu1 }
 0x3d6   : > { %v2380_v4 = vpop.f32.mrf.mxu1 }
 0x3e0   : > { %v1735_v5 = vpop.f32.mrf.mxu1 }
 0x3e1   : > { %v764_v6 = vsel %vm299_vm0, %v1735_v5, -inf }
 0x3e2   : > { %765 = vmax.xlane.f32.xlu1 %v764_v6  ;;  %v743_v7 = vpop.f32.mrf.mxu1 }
 0x3e3   : > { %v758_v9 = vsel %vm299_vm0, %v743_v7, -inf }
 0x3e4   : > { %v1736_v8 = vpop.f32.mrf.mxu1 }
 0x3e5   : > { %v767_v12 = vsel %vm299_vm0, %v1736_v8, -inf }
 0x3e6   : > { %759 = vmax.xlane.f32.xlu1 %v758_v9  ;;  %v746_v10 = vpop.f32.mrf.mxu1 }
 0x3e7   : > { %v761_v11 = vsel %vm299_vm0, %v746_v10, -inf }
 0x3e8   : > { %762 = vmax.xlane.f32.xlu0 %v761_v11 }
 0x3ea   : > { %768 = vmax.xlane.f32.xlu1 %v767_v12 }
 0x3fb   : > { %914 = vrot.lane.b32.xlu1 %v1901_v14, %s2147_s8 }
 0x3fe   : > { %796 = vrot.lane.b32.xlu0 %v2349_v39, %s2146_s25 }
 0x3ff   : > { %912 = vrot.lane.b32.xlu1 %v2386_v16, %s2147_s8 }
 0x402   : > { %898 = vrot.lane.b32.xlu0 %v2332_v15, %s2147_s8 }
 0x403   : > { %900 = vrot.lane.b32.xlu1 %v2330_v13, %s2147_s8  ;;  %s2519_s8 = scalar_lea.hbm %s2573_s4, %s1652_s27 }
 0x407   : > { %1017 = vrot.lane.b32.xlu1 %v1901_v14, %s2148_s12 }
 0x46b   : > { %v766_v17 = vpop.xlane.xlu1 %765 }
 0x46c   : > { %v772_v18 = vsub.f32 %v1735_v5, %v766_v17 }
 0x46e   : > { %v778_v24 = vmul.f32 1.442695, %v772_v18 }
 0x46f   : > { %v760_v19 = vpop.xlane.xlu1 %759 }
 0x470   : > { %v770_v20 = vsub.f32 %v743_v7, %v760_v19 }
 0x471   : > { %v763_v21 = vpop.xlane.xlu0 %762 }
 0x472   : > { %v774_v22 = vmul.f32 1.442695, %v770_v20  ;;  %v771_v23 = vsub.f32 %v746_v10, %v763_v21 }
 0x473   : > { %v769_v25 = vpop.xlane.xlu1 %768 }
 0x474   : > { %v776_v26 = vmul.f32 1.442695, %v771_v23  ;;  %v773_v27 = vsub.f32 %v1736_v8, %v769_v25  ;;  %1917 = vpow2.f32 %v774_v22 }
 0x475   : > { %v797_v28 = vpop.permute.xlu0 %796 }
 0x476   : > { %1919 = vpow2.f32 %v776_v26  ;;  %v780_v29 = vmul.f32 1.442695, %v773_v27  ;;  %1739 = vmatprep.subr.bf16.mxu0 %v797_v28 }
 0x477   : > { %1921 = vpow2.f32 %v778_v24  ;;  %1740 = vmatpush3.bf16.msra.mxu0 %v797_v28  ;;  %v915_v30 = vpop.permute.xlu1 %914 }
 0x478   : > { %1923 = vpow2.f32 %v780_v29  ;;  %1789 = vmatprep.subr.msk.bf16.mxu0 %vm483_vm1, %v915_v30  ;;  %v926_v40 = vsel %vm483_vm1, %v915_v30, 0 }
 0x479   : > { %v899_v41 = vpop.permute.xlu0 %898 }
 0x47b   : > { %v913_v31 = vpop.permute.xlu1 %912 }
 0x47c   : > { %v923_v42 = vsel %vm483_vm1, %v913_v31, 0 }
 0x47f   : > { %v901_v32 = vpop.permute.xlu1 %900 }
 0x481   : > { %v2395_v33 = vpop.eup %1917 }
 0x483   : > { %v2397_v34 = vpop.eup %1919  ;;  %v1018_v35 = vpop.permute.xlu1 %1017 }
 0x484   : > { %v2399_v36 = vpop.eup %1921  ;;  %1753 = vmatprep.subr.bf16.mxu1 %v1018_v35  ;;  %v794_v37 = vpack.c.bf16 %v2397_v34, %v2395_v33 }
 0x485   : > { %v2403_v38 = vpop.eup %1923  ;;  %1754 = vmatpush3.bf16.msra.mxu1 %v1018_v35 }
 0x486   : > { %1741 = vmatprep.mubr.msk.bf16.mxu0 %vm299_vm0, %v794_v37  ;;  %v795_v39 = vpack.c.bf16 %v2403_v38, %v2399_v36 }
 0x488   : > { %1742 = vmatmul.mubr.msk.bf16.vlgmr.msra.gmra.mxu0 %vm299_vm0, %v795_v39 }
 0x489   : > { %1746 = vmatpush3.bf16.xpose.msra.mxu0 %v926_v40  ;;  %1749 = vmatprep.mubr.msk.bf16.mxu0 %vm483_vm1, %v899_v41 }
 0x48a   : > { %1790 = vmatprep.subr.msk.bf16.mxu0 %vm483_vm1, %v913_v31 }
 0x491   : > { %1748 = vmatpush3.bf16.xpose.msra.mxu0 %v923_v42  ;;  %v782_v42 = vsel %vm299_vm0, %v2395_v33, 0.0 }
 0x498   : > { %1750 = vmatmul.mubr.msk.bf16.vlgmr.msra.gmra.mxu0 %vm483_vm1, %v901_v32 }
 0x548   : > { %v2414_v43 = vpop.f32.mrf.mxu0 }
 0x54a   : > { %v2416_v44 = vpop.f32.mrf.mxu0 }
 0x54c   : > { %v2418_v45 = vpop.f32.mrf.mxu0 }
 0x54e   : > { %v2420_v46 = vpop.f32.mrf.mxu0 }
 0x558   : > { %v1751_v47 = vpop.f32.mrf.mxu0 }
 0x559   : > { %v983_v48 = vsel %vm299_vm0, %v1751_v47, -inf }
 0x55a   : > { %984 = vmax.xlane.f32.xlu0 %v983_v48  ;;  %v962_v49 = vpop.f32.mrf.mxu0  ;;  %v788_v48 = vsel %vm299_vm0, %v2399_v36, 0.0 }
 0x55b   : > { %v977_v51 = vsel %vm299_vm0, %v962_v49, -inf }
 0x55c   : > { %v1752_v50 = vpop.f32.mrf.mxu0 }
 0x55d   : > { %v986_v54 = vsel %vm299_vm0, %v1752_v50, -inf }
 0x55e   : > { %978 = vmax.xlane.f32.xlu0 %v977_v51  ;;  %v965_v52 = vpop.f32.mrf.mxu0 }
 0x55f   : > { %v980_v53 = vsel %vm299_vm0, %v965_v52, -inf }
 0x560   : > { %981 = vmax.xlane.f32.xlu1 %v980_v53 }
 0x562   : > { %987 = vmax.xlane.f32.xlu0 %v986_v54 }
 0x571   : > { %1133 = vrot.lane.b32.xlu1 %v2426_v56, %s2149_s14 }
 0x575   : > { %1131 = vrot.lane.b32.xlu1 %v1904_v60, %s2149_s14 }
 0x578   : > { %1015 = vrot.lane.b32.xlu0 %v2386_v16, %s2148_s12  ;;  %s2053_s12 = scalar_lea.vmem %s2513_s13, 512 }
 0x579   : > { %1119 = vrot.lane.b32.xlu1 %v2330_v13, %s2149_s14  ;;  %p2054_p1 = scmp.ne.s32.totalorder %s2513_s13, %s2053_s12 }
 0x57b   : > { %p2055_p4 = pnand %p2054_p1, %p2282_p3 }
 0x57c   : > { %1117 = vrot.lane.b32.xlu0 %v2332_v15, %s2149_s14  ;;  %s2154_s14 = smov [#allocation10]  }
 0x57d   : > { %p2056_p6 = pneg %p2055_p4 }
 0x5e3   : > { %v985_v61 = vpop.xlane.xlu0 %984 }
 0x5e4   : > { %v991_v62 = vsub.f32 %v1751_v47, %v985_v61  ;;  %v785_v47 = vsel %vm299_vm0, %v2397_v34, 0.0 }
 0x5e6   : > { %v997_v8 = vmul.f32 1.442695, %v991_v62 }
 0x5e7   : > { %v979_v63 = vpop.xlane.xlu0 %978 }
 0x5e8   : > { %v989_v0 = vsub.f32 %v962_v49, %v979_v63  ;;  %v791_v49 = vsel %vm299_vm0, %v2403_v38, 0.0 }
 0x5e9   : > { %v982_v5 = vpop.xlane.xlu1 %981 }
 0x5ea   : > { %v993_v6 = vmul.f32 1.442695, %v989_v0  ;;  %v990_v7 = vsub.f32 %v965_v52, %v982_v5 }
 0x5eb   : > { %v988_v9 = vpop.xlane.xlu0 %987 }
 0x5ec   : > { %v995_v10 = vmul.f32 1.442695, %v990_v7  ;;  %v992_v11 = vsub.f32 %v1752_v50, %v988_v9  ;;  %1925 = vpow2.f32 %v993_v6 }
 0x5ed   : > { %v1134_v13 = vpop.permute.xlu1 %1133 }
 0x5ee   : > { %1927 = vpow2.f32 %v995_v10  ;;  %v999_v12 = vmul.f32 1.442695, %v992_v11  ;;  %v1145_v21 = vsel %vm483_vm1, %v1134_v13, 0 }
 0x5ef   : > { %1929 = vpow2.f32 %v997_v8  ;;  %v1016_v14 = vpop.permute.xlu0 %1015 }
 0x5f0   : > { %1931 = vpow2.f32 %v999_v12  ;;  %1755 = vmatprep.subr.bf16.mxu1 %v1016_v14 }
 0x5f1   : > { %1756 = vmatpush3.bf16.msra.mxu1 %v1016_v14  ;;  %v1132_v23 = vpop.permute.xlu1 %1131 }
 0x5f2   : > { %1791 = vmatprep.subr.msk.bf16.mxu1 %vm483_vm1, %v1134_v13  ;;  %v1142_v24 = vsel %vm483_vm1, %v1132_v23, 0 }
 0x5f3   : > { %v1118_v22 = vpop.permute.xlu0 %1117 }
 0x5f5   : > { %v1120_v25 = vpop.permute.xlu1 %1119 }
 0x5f9   : > { %v1926_v15 = vpop.eup %1925 }
 0x5fa   : > { %v1001_v50 = vsel %vm299_vm0, %v1926_v15, 0.0 }
 0x5fb   : > { %v1928_v16 = vpop.eup %1927 }
 0x5fc   : > { %v1930_v17 = vpop.eup %1929  ;;  %v1013_v18 = vpack.c.bf16 %v1928_v16, %v1926_v15  ;;  %v1004_v51 = vsel %vm299_vm0, %v1928_v16, 0.0 }
 0x5fd   : > { %v1932_v19 = vpop.eup %1931  ;;  %v1007_v33 = vsel %vm299_vm0, %v1930_v17, 0.0 }
 0x5fe   : > { %1757 = vmatprep.mubr.msk.bf16.mxu1 %vm299_vm0, %v1013_v18  ;;  %v1014_v20 = vpack.c.bf16 %v1932_v19, %v1930_v17  ;;  %v1010_v34 = vsel %vm299_vm0, %v1932_v19, 0.0  ;;  %v569_v18 = vsel %vm299_vm0, %v2355_v55, 0.0  ;;  %v572_v19 = vsel %vm299_vm0, %v2359_v58, 0.0 }
 0x600   : > { %1758 = vmatmul.mubr.msk.bf16.vlgmr.msra.gmra.mxu1 %vm299_vm0, %v1014_v20  ;;  %v575_v20 = vsel %vm299_vm0, %v2361_v59, 0.0 }
 0x601   : > { %1762 = vmatpush3.bf16.xpose.msra.mxu1 %v1145_v21  ;;  %1765 = vmatprep.mubr.msk.bf16.mxu1 %vm483_vm1, %v1118_v22  ;;  %v578_v21 = vsel %vm299_vm0, %v2357_v57, 0.0 }
 0x602   : > { %1792 = vmatprep.subr.msk.bf16.mxu1 %vm483_vm1, %v1132_v23 }
 0x609   : > { %1764 = vmatpush3.bf16.xpose.msra.mxu1 %v1142_v24 }
 0x610   : > { %1766 = vmatmul.mubr.msk.bf16.vlgmr.msra.gmra.mxu1 %vm483_vm1, %v1120_v25 }
 0x6c0   : > { %v2441_v26 = vpop.f32.mrf.mxu1 }
 0x6c2   : > { %v2443_v27 = vpop.f32.mrf.mxu1 }
 0x6c4   : > { %v2445_v28 = vpop.f32.mrf.mxu1 }
 0x6c6   : > { %v2447_v29 = vpop.f32.mrf.mxu1 }
 0x6d0   : > { %v1767_v30 = vpop.f32.mrf.mxu1 }
 0x6d1   : > { %v1202_v31 = vsel %vm299_vm0, %v1767_v30, -inf }
 0x6d2   : > { %1203 = vmax.xlane.f32.xlu0 %v1202_v31  ;;  %v1181_v32 = vpop.f32.mrf.mxu1 }
 0x6d3   : > { %v1196_v37 = vsel %vm299_vm0, %v1181_v32, -inf }
 0x6d4   : > { %v1768_v35 = vpop.f32.mrf.mxu1 }
 0x6d5   : > { %v1205_v41 = vsel %vm299_vm0, %v1768_v35, -inf }
 0x6d6   : > { %1197 = vmax.xlane.f32.xlu0 %v1196_v37  ;;  %v1184_v39 = vpop.f32.mrf.mxu1 }
 0x6d7   : > { %v1199_v40 = vsel %vm299_vm0, %v1184_v39, -inf }
 0x6d8   : > { %1200 = vmax.xlane.f32.xlu1 %v1199_v40 }
 0x6da   : > { %1206 = vmax.xlane.f32.xlu0 %v1205_v41 }
 0x6e9   : > { %1236 = vrot.lane.b32.xlu1 %v2426_v56, %s2150_s24 }
 0x6f0   : > { %1234 = vrot.lane.b32.xlu0 %v1904_v60, %s2150_s24  ;;  %s2057_s24 = sshll.u32 %s2154_s14, 4  ;;  %s2058_s24 = int_to_ptr.vmem [resolvable:$false] %s2057_s24 }
 0x6f1   : > { %p2060_p8 = scmp.lt.s32.totalorder %s2513_s13, %s2058_s24 }
 0x70d   : > { %783 = vadd.xlane.f32.xlu1 %v782_v42 }
 0x70f   : > { %786 = vadd.xlane.f32.xlu0 %v785_v47 }
 0x711   : > { %789 = vadd.xlane.f32.xlu1 %v788_v48 }
 0x713   : > { %792 = vadd.xlane.f32.xlu0 %v791_v49 }
 0x715   : > { %1002 = vadd.xlane.f32.xlu1 %v1001_v50 }
 0x717   : > { %1005 = vadd.xlane.f32.xlu0 %v1004_v51 }
 0x719   : > { %1008 = vadd.xlane.f32.xlu1 %v1007_v33 }
 0x71b   : > { %1011 = vadd.xlane.f32.xlu0 %v1010_v34 }
 0x75b   : > { %v1204_v52 = vpop.xlane.xlu0 %1203 }
 0x75c   : > { %v1210_v53 = vsub.f32 %v1767_v30, %v1204_v52 }
 0x75e   : > { %v1216_v56 = vmul.f32 1.442695, %v1210_v53 }
 0x75f   : > { %v1198_v36 = vpop.xlane.xlu0 %1197 }
 0x760   : > { %v1208_v54 = vsub.f32 %v1181_v32, %v1198_v36 }
 0x761   : > { %v1201_v60 = vpop.xlane.xlu1 %1200 }
 0x762   : > { %v1212_v38 = vmul.f32 1.442695, %v1208_v54  ;;  %v1209_v61 = vsub.f32 %v1184_v39, %v1201_v60 }
 0x763   : > { %v1207_v62 = vpop.xlane.xlu0 %1206 }
 0x764   : > { %1933 = vpow2.f32 %v1212_v38  ;;  %v1214_v63 = vmul.f32 1.442695, %v1209_v61  ;;  %v1211_v0 = vsub.f32 %v1768_v35, %v1207_v62 }
 0x765   : > { %1935 = vpow2.f32 %v1216_v56  ;;  %v1237_v5 = vpop.permute.xlu1 %1236 }
 0x766   : > { %1937 = vpow2.f32 %v1214_v63  ;;  %v1218_v6 = vmul.f32 1.442695, %v1211_v0  ;;  %1769 = vmatprep.subr.bf16.mxu0 %v1237_v5 }
 0x767   : > { %v1235_v7 = vpop.permute.xlu0 %1234  ;;  %1770 = vmatpush3.bf16.msra.mxu0 %v1237_v5 }
 0x768   : > { %1939 = vpow2.f32 %v1218_v6  ;;  %1771 = vmatprep.subr.bf16.mxu0 %v1235_v7 }
 0x76b   : > { %1772 = vmatpush3.bf16.msra.mxu0 %v1235_v7 }
 0x771   : > { %v1934_v8 = vpop.eup %1933 }
 0x772   : > { %v1936_v9 = vpop.eup %1935  ;;  %v1220_v10 = vsel %vm299_vm0, %v1934_v8, 0.0 }
 0x773   : > { %v1938_v11 = vpop.eup %1937  ;;  %1221 = vadd.xlane.f32.xlu1 %v1220_v10  ;;  %v1226_v15 = vsel %vm299_vm0, %v1936_v9, 0.0 }
 0x774   : > { %v1223_v12 = vsel %vm299_vm0, %v1938_v11, 0.0  ;;  %v1232_v14 = vpack.c.bf16 %v1938_v11, %v1934_v8 }
 0x775   : > { %v1940_v13 = vpop.eup %1939  ;;  %1224 = vadd.xlane.f32.xlu0 %v1223_v12 }
 0x776   : > { %1773 = vmatprep.mubr.msk.bf16.mxu0 %vm299_vm0, %v1232_v14  ;;  %v1233_v16 = vpack.c.bf16 %v1940_v13, %v1936_v9  ;;  %v1229_v17 = vsel %vm299_vm0, %v1940_v13, 0.0 }
 0x777   : > { %1227 = vadd.xlane.f32.xlu1 %v1226_v15 }
 0x778   : > { %1774 = vmatmul.mubr.msk.bf16.vlgmr.msra.gmra.mxu0 %vm299_vm0, %v1233_v16 }
 0x779   : > { %1230 = vadd.xlane.f32.xlu0 %v1229_v17 }
 0x77b   : > { %570 = vadd.xlane.f32.xlu1 %v569_v18 }
 0x77d   : > { %573 = vadd.xlane.f32.xlu0 %v572_v19 }
 0x77f   : > { %576 = vadd.xlane.f32.xlu1 %v575_v20 }
 0x781   : > { %579 = vadd.xlane.f32.xlu0 %v578_v21  ;;  %v1905_v21 = vld [vmem:[#allocation9 + $0x8] sm:$0xff]  }
 0x782   : > { %1777 = vmatprep.subr.bf16.mxu0 %v1905_v21 }
 0x783   : > { %1778 = vmatpush3.bf16.msra.mxu0 %v1905_v21 }
 0x796   : > { %v784_v22 = vpop.xlane.xlu1 %783 }
 0x797   : > { %1941 = vrcp.f32 %v784_v22  ;;  %v1906_v22 = vld [vmem:[#allocation9] sm:$0xff]  }
 0x798   : > { %v787_v23 = vpop.xlane.xlu0 %786  ;;  %1779 = vmatprep.subr.bf16.mxu0 %v1906_v22 }
 0x799   : > { %1943 = vrcp.f32 %v787_v23  ;;  %1780 = vmatpush3.bf16.msra.mxu0 %v1906_v22 }
 0x79a   : > { %v790_v24 = vpop.xlane.xlu1 %789 }
 0x79b   : > { %1945 = vrcp.f32 %v790_v24 }
 0x79c   : > { %v793_v55 = vpop.xlane.xlu0 %792 }
 0x79d   : > { %1947 = vrcp.f32 %v793_v55 }
 0x79e   : > { %v1003_v25 = vpop.xlane.xlu1 %1002 }
 0x79f   : > { %1949 = vrcp.f32 %v1003_v25 }
 0x7a0   : > { %v1006_v58 = vpop.xlane.xlu0 %1005 }
 0x7a1   : > { %1951 = vrcp.f32 %v1006_v58 }
 0x7a2   : > { %v1009_v30 = vpop.xlane.xlu1 %1008 }
 0x7a3   : > { %1953 = vrcp.f32 %v1009_v30 }
 0x7a4   : > { %v1942_v59 = vpop.eup %1941  ;;  %v1012_v31 = vpop.xlane.xlu0 %1011 }
 0x7a5   : > { %1955 = vrcp.f32 %v1012_v31  ;;  %v861_v57 = vmul.f32 %v1942_v59, %v2416_v44 }
 0x7a6   : > { %v1944_v32 = vpop.eup %1943 }
 0x7a7   : > { %v1640_v35 = vpack.c.bf16 %v861_v57, %v861_v57  ;;  %v862_v37 = vmul.f32 %v1944_v32, %v2420_v46 }
 0x7a8   : > { %v1946_v39 = vpop.eup %1945 }
 0x7a9   : > { %877 = vrot.lane.b32.xlu1 %v1640_v35, %s2151_s29  ;;  %v1641_v40 = vpack.c.bf16 %v862_v37, %v862_v37  ;;  %v863_v41 = vmul.f32 %v1946_v39, %v2414_v43 }
 0x7aa   : > { %v1948_v42 = vpop.eup %1947 }
 0x7ab   : > { %879 = vrot.lane.b32.xlu0 %v1641_v40, %s2151_s29  ;;  %v1642_v47 = vpack.c.bf16 %v863_v41, %v863_v41  ;;  %v864_v48 = vmul.f32 %v1948_v42, %v2418_v45 }
 0x7ac   : > { %v1950_v49 = vpop.eup %1949 }
 0x7ad   : > { %881 = vrot.lane.b32.xlu1 %v1642_v47, %s2151_s29  ;;  %v1080_v44 = vmul.f32 %v1950_v49, %v2443_v27  ;;  %v1643_v46 = vpack.c.bf16 %v864_v48, %v864_v48 }
 0x7ae   : > { %v1952_v50 = vpop.eup %1951 }
 0x7af   : > { %v1644_v51 = vpack.c.bf16 %v1080_v44, %v1080_v44  ;;  %v1081_v33 = vmul.f32 %v1952_v50, %v2447_v29  ;;  %v1619_v44 = vld [vmem:[%s2572_s3] ss:$0 sm:$0xff] }
 0x7b0   : > { %v1954_v34 = vpop.eup %1953 }
 0x7b1   : > { %883 = vrot.lane.b32.xlu1 %v1643_v46, %s2151_s29  ;;  %1096 = vrot.lane.b32.xlu0 %v1644_v51, %s2152_s22  ;;  %v1082_v43 = vmul.f32 %v1954_v34, %v2441_v26  ;;  %v1645_v53 = vpack.c.bf16 %v1081_v33, %v1081_v33 }
 0x7b2   : > { %v1956_v52 = vpop.eup %1955 }
 0x7b3   : > { %v1646_v45 = vpack.c.bf16 %v1082_v43, %v1082_v43  ;;  %v1083_v36 = vmul.f32 %v1956_v52, %v2445_v28 }
 0x7b5   : > { %1098 = vrot.lane.b32.xlu1 %v1645_v53, %s2152_s22  ;;  %1100 = vrot.lane.b32.xlu0 %v1646_v45, %s2152_s22  ;;  %v1647_v27 = vpack.c.bf16 %v1083_v36, %v1083_v36 }
 0x7b9   : > { %1102 = vrot.lane.b32.xlu1 %v1647_v27, %s2152_s22  ;;  %s2059_s22 = scalar_lea.vmem %s2058_s24, 1024 }
 0x7ba   : > { %p2061_p10 = scmp.lt.s32.totalorder %s2059_s22, %s2053_s12 }
 0x7bc   : > { %p2062_p11 = por %p2061_p10, %p2060_p8 }
 0x7be   : > { %p2063_p2 = pnand %p2062_p11, %p2056_p6 }
 0x7fc   : > { %v1222_v54 = vpop.xlane.xlu1 %1221 }
 0x7fe   : > { %v1225_v56 = vpop.xlane.xlu0 %1224 }
 0x800   : > { %v1228_v60 = vpop.xlane.xlu1 %1227 }
 0x802   : > { %v1231_v29 = vpop.xlane.xlu0 %1230 }
 0x804   : > { %v571_v38 = vpop.xlane.xlu1 %570 }
 0x805   : > { %1957 = vrcp.f32 %v571_v38 }
 0x806   : > { %v574_v61 = vpop.xlane.xlu0 %573 }
 0x807   : > { %1959 = vrcp.f32 %v574_v61 }
 0x808   : > { %v577_v62 = vpop.xlane.xlu1 %576 }
 0x809   : > { %1961 = vrcp.f32 %v577_v62 }
 0x80a   : > { %v580_v26 = vpop.xlane.xlu0 %579 }
 0x80b   : > { %1963 = vrcp.f32 %v580_v26 }
 0x80c   : > { %1965 = vrcp.f32 %v1222_v54 }
 0x80d   : > { %1967 = vrcp.f32 %v1228_v60 }
 0x80e   : > { %1969 = vrcp.f32 %v1225_v56 }
 0x80f   : > { %1971 = vrcp.f32 %v1231_v29 }
 0x812   : > { %v1958_v63 = vpop.eup %1957 }
 0x813   : > { %v648_v0 = vmul.f32 %v1958_v63, %v2376_v2 }
 0x814   : > { %v1960_v28 = vpop.eup %1959 }
 0x815   : > { %v1636_v5 = vpack.c.bf16 %v648_v0, %v648_v0  ;;  %v649_v6 = vmul.f32 %v1960_v28, %v2380_v4 }
 0x816   : > { %v1962_v7 = vpop.eup %1961 }
 0x817   : > { %669 = vst.msk [vmem:[#allocation3] sm:$0xf] %vm668_vm3, %v1636_v5  ;;  %v1637_v8 = vpack.c.bf16 %v649_v6, %v649_v6  ;;  %v650_v9 = vmul.f32 %v1962_v7, %v2374_v1 }
 0x818   : > { %v1964_v10 = vpop.eup %1963 }
 0x819   : > { %670 = vst.msk [vmem:[#allocation3 + $0x4] sm:$0xf] %vm668_vm3, %v1637_v8  ;;  %v1638_v11 = vpack.c.bf16 %v650_v9, %v650_v9  ;;  %v651_v12 = vmul.f32 %v1964_v10, %v2378_v3  ;;  %v1966_v19 = vpop.eup %1965 }
 0x81a   : > { %v1968_v24 = vpop.eup %1967 }
 0x81b   : > { %v878_v14 = vpop.permute.xlu1 %877  ;;  %671 = vst.msk [vmem:[#allocation3 + $0x8] sm:$0xf] %vm668_vm3, %v1638_v11  ;;  %v1639_v2 = vpack.c.bf16 %v651_v12, %v651_v12  ;;  %v1970_v30 = vpop.eup %1969 }
 0x81c   : > { %890 = vst.msk [vmem:[#allocation3] sm:$0xf] %vm889_vm4, %v878_v14  ;;  %v1972_v57 = vpop.eup %1971 }
 0x81d   : > { %v880_v4 = vpop.permute.xlu0 %879  ;;  %672 = vst.msk [vmem:[#allocation3 + $0xc] sm:$0xf] %vm668_vm3, %v1639_v2 }
 0x81e   : > { %891 = vst.msk [vmem:[#allocation3 + $0x4] sm:$0xf] %vm889_vm4, %v880_v4 }
 0x81f   : > { %v882_v13 = vpop.permute.xlu1 %881 }
 0x820   : > { %892 = vst.msk [vmem:[#allocation3 + $0x8] sm:$0xf] %vm889_vm4, %v882_v13 }
 0x823   : > { %v1097_v1 = vpop.permute.xlu0 %1096  ;;  %v884_v15 = vpop.permute.xlu1 %883 }
 0x824   : > { %1109 = vst.msk [vmem:[#allocation3] sm:$0xf] %vm1108_vm5, %v1097_v1 }
 0x825   : > { %893 = vst.msk [vmem:[#allocation3 + $0xc] sm:$0xf] %vm889_vm4, %v884_v15 }
 0x827   : > { %v1101_v3 = vpop.permute.xlu0 %1100  ;;  %v1099_v16 = vpop.permute.xlu1 %1098 }
 0x828   : > { %1111 = vst.msk [vmem:[#allocation3 + $0x8] sm:$0xf] %vm1108_vm5, %v1101_v3  ;;  %1110 = vst.msk [vmem:[#allocation3 + $0x4] sm:$0xf] %vm1108_vm5, %v1099_v16 }
 0x82b   : > { %v1103_v17 = vpop.permute.xlu1 %1102 }
 0x82c   : > { %1112 = vst.msk [vmem:[#allocation3 + $0xc] sm:$0xf] %vm1108_vm5, %v1103_v17 }
 0x838   : > { %v1775_v18 = vpop.f32.mrf.mxu0 }
 0x839   : > { %v1301_v25 = vmul.f32 %v1968_v24, %v1775_v18 }
 0x83a   : > { %v1280_v20 = vpop.f32.mrf.mxu0 }
 0x83b   : > { %v1299_v23 = vmul.f32 %v1966_v19, %v1280_v20  ;;  %v1650_v32 = vpack.c.bf16 %v1301_v25, %v1301_v25 }
 0x83c   : > { %v1776_v55 = vpop.f32.mrf.mxu0 }
 0x83d   : > { %v1648_v58 = vpack.c.bf16 %v1299_v23, %v1299_v23  ;;  %v1302_v35 = vmul.f32 %v1972_v57, %v1776_v55 }
 0x83e   : > { %v1283_v59 = vpop.f32.mrf.mxu0 }
 0x83f   : > { %v1300_v31 = vmul.f32 %v1970_v30, %v1283_v59  ;;  %1315 = vrot.lane.b32.xlu0 %v1648_v58, %s2153_s6  ;;  %v1651_v39 = vpack.c.bf16 %v1302_v35, %v1302_v35 }
 0x841   : > { %v1649_v37 = vpack.c.bf16 %v1300_v31, %v1300_v31 }
 0x843   : > { %1317 = vrot.lane.b32.xlu1 %v1649_v37, %s2153_s6  ;;  %1319 = vrot.lane.b32.xlu0 %v1650_v32, %s2153_s6 }
 0x847   : > { %1321 = vrot.lane.b32.xlu1 %v1651_v39, %s2153_s6 }
 0x8b1   : > { %v1316_v40 = vpop.permute.xlu0 %1315 }
 0x8b2   : > { %1328 = vst.msk [vmem:[#allocation3] sm:$0xf] %vm1327_vm6, %v1316_v40 }
 0x8b5   : > { %v1320_v41 = vpop.permute.xlu0 %1319  ;;  %v1318_v42 = vpop.permute.xlu1 %1317 }
 0x8b6   : > { %1330 = vst.msk [vmem:[#allocation3 + $0x8] sm:$0xf] %vm1327_vm6, %v1320_v41  ;;  %1329 = vst.msk [vmem:[#allocation3 + $0x4] sm:$0xf] %vm1327_vm6, %v1318_v42 }
 0x8b9   : > { %v1322_v47 = vpop.permute.xlu1 %1321 }
 0x8ba   : > { %1331 = vst.msk [vmem:[#allocation3 + $0xc] sm:$0xf] %vm1327_vm6, %v1322_v47 }
 0x8bd   : > { %v1907_v48 = vld [vmem:[#allocation3] sm:$0xff]  }
 0x8be   : > { %1781 = vmatprep.mubr.msk.bf16.mxu0 %vm299_vm0, %v1907_v48 }
 0x8c1   : > { %v1908_v49 = vld [vmem:[#allocation3 + $0x8] sm:$0xff]  }
 0x8c2   : > { %1782 = vmatmul.mubr.msk.bf16.vlgmr.msra.gmra.mxu0 %vm299_vm0, %v1908_v49 }
 0x982   : > { %v1783_v50 = vpop.f32.mrf.mxu0 }
 0x983   : > { %v1418_v46 = vadd.f32 %v1783_v50, %v1619_v44 }
 0x984   : > { %v1409_v51 = vpop.f32.mrf.mxu0 }
 0x985   : > { %1426 = vst.msk [vmem:[%s258_s11 + $0x10] sm:$0xff] %vm299_vm0, %v1418_v46  ;;  %v1410_v33 = vadd.f32 %v1619_v44, %v1409_v51 }
 0x986   : > { %v1784_v34 = vpop.f32.mrf.mxu0 }
 0x987   : > { %1424 = vst.msk [vmem:[%s258_s11] sm:$0xff] %vm299_vm0, %v1410_v33  ;;  %v1421_v43 = vadd.f32 %v1784_v34, %v1619_v44 }
 0x988   : > { %v1412_v52 = vpop.f32.mrf.mxu0 }
 0x989   : > { %1427 = vst.msk [vmem:[%s258_s11 + $0x18] sm:$0xff] %vm299_vm0, %v1421_v43  ;;  %v1413_v53 = vadd.f32 %v1619_v44, %v1412_v52 }
 0x98b   : > { %1425 = vst.msk [vmem:[%s258_s11 + $0x8] sm:$0xff] %vm299_vm0, %v1413_v53 }
 0x98c   : > { %2066 = shalt.err (!%p2063_p2)
}
 0x98d   : > { %s2067_s6 = scalar_lea.hbm %s2519_s8, 512  ;;  %s2071_s9 = scalar_lea.hbm %s2573_s4, 1024 }
 0x98e   : > { %p2068_p9 = scmp.ne.s32.totalorder %s2519_s8, %s2067_s6  ;;  %p2072_p0 = scmp.lt.s32.totalorder %s2519_s8, %s2573_s4 }
 0x98f   : > { %p2073_p7 = scmp.lt.s32.totalorder %s2071_s9, %s2067_s6 }
 0x990   : > { %p2069_p12 = pnand %p2068_p9, %p2282_p3 }
 0x991   : > { %p2074_p5 = por %p2073_p7, %p2072_p0 }
 0x992   : > { %p2070_p13 = pneg %p2069_p12 }
 0x994   : > { %p2075_p1 = pnand %p2074_p5, %p2070_p13 }
 0x996   : > { %2078 = shalt.err (!%p2075_p1)
}
 0x997   : > { %s2155_s23 = smov 128  }
 0x998   : > { %1803 = dma.vmem_to_hbm [thread:$0]  (%p2282_p3), %s2513_s13, 512, %s2519_s8, %s1429_s18, %s2155_s23, %s2155_s23, %s2151_s29  }
 0x999 PF: > { %s1459_s25 = sand.u32 1, %s2117_s15   ;;  %p2586_p4 = scmp.ne.s32.totalorder %s2579_s26, 0 }
 0x99a   : > { %p2587_p6 = scmp.ge.s32.totalorder %s2137_s20, 2  ;;  %s1460_s12 = scalar_lea.sflag [#allocation6], %s1459_s25 }
 0x99c   : > { %p1817_p8 = pnand %p2587_p6, %p2586_p4 }
 0x99e   : > { %p1818_p10 = pneg %p1817_p8 }
 0x9a0   : > { %2112 = dma.done.wait (%p1818_p10), %s1460_s12, 512  }
 0x9a1   : > { %2114 = vsyncadd (%p1818_p10), %s1460_s12, 4294966784  ;;  %s21_s20 = sadd.s32 1, %s2137_s20   ;;  %s2588_s15 = smov %s2121_s16 }
 0x9a2   : > { %p18_p11 = scmp.ge.s32.totalorder %s21_s20, 4   ;;  %s2589_s16 = smov %s2125_s17 }
 0x9a3   : > { %s2590_s17 = smov %s2291_s7  ;;  %s2591_s18 = smov %s2133_s19 }
 0x9a4   : > { %s2592_s19 = smov %s2594_s21  ;;  %20 = sbr.rel (!%p18_p11) target bundleno = 7 (0x7), region = 94 }
 0x9a9   :  { %1465 = vsyncpa [#allocation5], 1 }
 0x9aa   :  { %1467 = vsyncpa [#allocation5 + $0x1], 1 }
 0x9ab   :  { %1468 = vsyncpa [#allocation8], 1 }
 0x9ac   :  { %1469 = vsyncpa [#allocation6], 1 }
 0x9ad   :  { %1471 = vsyncpa [#allocation6 + $0x1], 1 }

</bundles_post_ra>
